<compile_context>
chip_gen: v7x
topology: tpu7x:2x2x1
jax: 0.10.0
libtpu: 0.0.40
codegen_flags: <defaults>
</compile_context>

<pallas_src>
import functools

import jax
import jax.numpy as jnp
from jax.experimental import pallas as pl
from jax.experimental.pallas import tpu as pltpu


# ----------------------------------------------------------------------------
# Fused Block kernel: expand(1x1)+BN+ReLU -> dw(3x3,stride)+BN+ReLU ->
#                     project(1x1)+BN [+ residual], one batch image per step.
# ----------------------------------------------------------------------------
def _block_kernel(x_ref, w1_ref, b1_ref, w2_ref, b2_ref, w3_ref, b3_ref,
                  *rest, H, W, Ho, Wo, stride, shortcut):
    if shortcut == "conv":
        wsc_ref, bsc_ref, o_ref, exp_ref = rest
    else:
        o_ref, exp_ref = rest

    Cin = x_ref.shape[-1]
    planes = w1_ref.shape[1]
    Cout = w3_ref.shape[1]

    # ---- 1x1 expand (MXU) + folded-BN bias + ReLU, into zero-padded VMEM scratch
    exp_ref[...] = jnp.zeros_like(exp_ref)          # zero the 1-pixel halo
    x2 = x_ref[0].reshape(H * W, Cin)
    e = jnp.dot(x2, w1_ref[...], preferred_element_type=jnp.float32) + b1_ref[...]
    e = jnp.maximum(e, 0.0)
    exp_ref[1:H + 1, 1:W + 1, :] = e.reshape(H, W, planes)

    # ---- depthwise 3x3 with direct strided taps + folded-BN bias + ReLU (VPU)
    w2v = w2_ref[...]                               # (3, 3, planes), scale pre-folded
    acc = jnp.zeros((Ho, Wo, planes), jnp.float32)
    for dy in range(3):
        for dx in range(3):
            if stride == 1:
                tap = exp_ref[dy:dy + Ho, dx:dx + Wo, :]
            else:
                tap = exp_ref[pl.ds(dy, Ho, stride=stride),
                              pl.ds(dx, Wo, stride=stride), :]
            acc = acc + tap * w2v[dy, dx, :]
    d = jnp.maximum(acc.reshape(Ho * Wo, planes) + b2_ref[...], 0.0)

    # ---- 1x1 project (MXU) + folded-BN bias, residual fused in
    out = jnp.dot(d, w3_ref[...], preferred_element_type=jnp.float32) + b3_ref[...]
    if shortcut == "conv":
        out = out + (jnp.dot(x2, wsc_ref[...], preferred_element_type=jnp.float32)
                     + bsc_ref[...])
    elif shortcut == "identity":
        out = out + x2
    o_ref[...] = out.reshape(1, Ho, Wo, Cout).astype(o_ref.dtype)


def block_forward(x_nchw, params, *, stride):
    """params: BN-folded weights (see fold_params). x_nchw: (N, Cin, H, W)."""
    x = jnp.transpose(x_nchw, (0, 2, 3, 1))         # -> NHWC (channels on lanes)
    N, H, W, Cin = x.shape
    planes = params["w1"].shape[1]
    Cout = params["w3"].shape[1]
    Ho = (H + 2 - 3) // stride + 1
    Wo = (W + 2 - 3) // stride + 1

    if stride == 1 and Cin != Cout:
        mode = "conv"
    elif stride == 1:
        mode = "identity"
    else:
        mode = "none"

    kernel = functools.partial(_block_kernel, H=H, W=W, Ho=Ho, Wo=Wo,
                               stride=stride, shortcut=mode)

    in_arrays = [x, params["w1"], params["b1"], params["w2"], params["b2"],
                 params["w3"], params["b3"]]
    in_specs = [
        pl.BlockSpec((1, H, W, Cin), lambda n: (n, 0, 0, 0)),
        pl.BlockSpec((Cin, planes), lambda n: (0, 0)),
        pl.BlockSpec((1, planes), lambda n: (0, 0)),
        pl.BlockSpec((3, 3, planes), lambda n: (0, 0, 0)),
        pl.BlockSpec((1, planes), lambda n: (0, 0)),
        pl.BlockSpec((planes, Cout), lambda n: (0, 0)),
        pl.BlockSpec((1, Cout), lambda n: (0, 0)),
    ]
    if mode == "conv":
        in_arrays += [params["wsc"], params["bsc"]]
        in_specs += [pl.BlockSpec((Cin, Cout), lambda n: (0, 0)),
                     pl.BlockSpec((1, Cout), lambda n: (0, 0))]

    out = pl.pallas_call(
        kernel,
        out_shape=jax.ShapeDtypeStruct((N, Ho, Wo, Cout), x.dtype),
        grid=(N,),
        in_specs=in_specs,
        out_specs=pl.BlockSpec((1, Ho, Wo, Cout), lambda n: (n, 0, 0, 0)),
        scratch_shapes=[pltpu.VMEM((H + 2, W + 2, planes), jnp.float32)],
        compiler_params=pltpu.CompilerParams(dimension_semantics=("parallel",)),
    )(*in_arrays)
    return jnp.transpose(out, (0, 3, 1, 2))          # back to NCHW


# ----------------------------------------------------------------------------
# Parameters: raw conv weights + BN stats (like the nn.Module, eval mode),
# plus a folding step that bakes the BN scale into the conv weights.
# ----------------------------------------------------------------------------
def init_params(key, in_planes, out_planes, expansion):
    planes = expansion * in_planes
    ks = iter(jax.random.split(key, 24))

    def bn(c):
        return dict(
            gamma=jax.random.uniform(next(ks), (c,), minval=0.5, maxval=1.5),
            beta=jax.random.normal(next(ks), (c,)) * 0.1,
            mean=jax.random.normal(next(ks), (c,)) * 0.1,
            var=jax.random.uniform(next(ks), (c,), minval=0.5, maxval=1.5),
        )

    p = dict(
        w1=(jax.random.normal(next(ks), (in_planes, planes)) * 0.2).astype(jnp.float32),
        bn1=bn(planes),
        w2=(jax.random.normal(next(ks), (3, 3, planes)) * 0.2).astype(jnp.float32),
        bn2=bn(planes),
        w3=(jax.random.normal(next(ks), (planes, out_planes)) * 0.2).astype(jnp.float32),
        bn3=bn(out_planes),
    )
    if in_planes != out_planes:   # shortcut conv + bn (only used when stride == 1)
        p["wsc"] = (jax.random.normal(next(ks), (in_planes, out_planes)) * 0.2).astype(jnp.float32)
        p["bnsc"] = bn(out_planes)
    return p


def _fold_bn(w, bnp, eps=1e-5, dw=False):
    scale = bnp["gamma"] / jnp.sqrt(bnp["var"] + eps)
    bias = bnp["beta"] - bnp["mean"] * scale
    wf = w * (scale[None, None, :] if dw else scale[None, :])
    return wf.astype(jnp.float32), bias.reshape(1, -1).astype(jnp.float32)


def fold_params(p):
    f = {}
    f["w1"], f["b1"] = _fold_bn(p["w1"], p["bn1"])
    f["w2"], f["b2"] = _fold_bn(p["w2"], p["bn2"], dw=True)
    f["w3"], f["b3"] = _fold_bn(p["w3"], p["bn3"])
    if "wsc" in p:
        f["wsc"], f["bsc"] = _fold_bn(p["wsc"], p["bnsc"])
    return f


# ----------------------------------------------------------------------------
# Pure-JAX reference (lax.conv + explicit BN) for verification
# ----------------------------------------------------------------------------
def ref_forward(x, p, *, stride, eps=1e-5):
    prec = jax.lax.Precision.HIGHEST

    def conv1x1(x, w):  # w: (Cin, Cout)
        k = jnp.transpose(w, (1, 0))[:, :, None, None]  # OIHW
        return jax.lax.conv_general_dilated(
            x, k, (1, 1), "VALID",
            dimension_numbers=("NCHW", "OIHW", "NCHW"), precision=prec)

    def bn(x, b):
        s = b["gamma"] / jnp.sqrt(b["var"] + eps)
        t = b["beta"] - b["mean"] * s
        return x * s.reshape(1, -1, 1, 1) + t.reshape(1, -1, 1, 1)

    out = jax.nn.relu(bn(conv1x1(x, p["w1"]), p["bn1"]))
    k2 = jnp.transpose(p["w2"], (2, 0, 1))[:, None, :, :]   # (C,1,3,3) OIHW
    out = jax.lax.conv_general_dilated(
        out, k2, (stride, stride), ((1, 1), (1, 1)),
        dimension_numbers=("NCHW", "OIHW", "NCHW"),
        feature_group_count=k2.shape[0], precision=prec)
    out = jax.nn.relu(bn(out, p["bn2"]))
    out = bn(conv1x1(out, p["w3"]), p["bn3"])
    if stride == 1:
        if x.shape[1] != out.shape[1]:
            sc = bn(conv1x1(x, p["wsc"]), p["bnsc"])
        else:
            sc = x
        out = out + sc
    return out


if __name__ == "__main__":
    N, H, W = 2, 16, 16
    configs = [
        # (in_planes, out_planes, expansion, stride)
        (4, 8, 2, 1),    # 1x1-conv shortcut path
        (8, 8, 2, 1),    # identity shortcut path
        (4, 8, 3, 2),    # strided depthwise, no shortcut
    ]
    key = jax.random.PRNGKey(0)
    fwd = jax.jit(block_forward, static_argnames=("stride",))

    for idx, (cin, cout, exp, stride) in enumerate(configs):
        kx, kp = jax.random.split(jax.random.fold_in(key, idx))
        x = jax.random.normal(kx, (N, cin, H, W), dtype=jnp.float32)
        raw = init_params(kp, cin, cout, exp)
        folded = fold_params(raw)

        out = jax.block_until_ready(fwd(x, folded, stride=stride))
        ref = jax.block_until_ready(ref_forward(x, raw, stride=stride))

        Ho = (H + 2 - 3) // stride + 1
        assert out.shape == ref.shape == (N, cout, Ho, Ho), (out.shape, ref.shape)
        max_err = float(jnp.max(jnp.abs(out - ref)))
        assert jnp.allclose(out, ref, atol=5e-3, rtol=5e-3), max_err

    print("KERNEL_OK")
</pallas_src>

<mosaic_0001>
module attributes {stable_mosaic.version = 11 : i64} {
  func.func @_block_kernel(%arg0: i32, %arg1: memref<1x16x16x4xf32, #tpu.memory_space<vmem>>, %arg2: memref<4x8xf32, #tpu.memory_space<vmem>>, %arg3: memref<1x8xf32, #tpu.memory_space<vmem>>, %arg4: memref<3x3x8xf32, #tpu.memory_space<vmem>>, %arg5: memref<1x8xf32, #tpu.memory_space<vmem>>, %arg6: memref<8x8xf32, #tpu.memory_space<vmem>>, %arg7: memref<1x8xf32, #tpu.memory_space<vmem>>, %arg8: memref<4x8xf32, #tpu.memory_space<vmem>>, %arg9: memref<1x8xf32, #tpu.memory_space<vmem>>, %arg10: memref<1x16x16x8xf32, #tpu.memory_space<vmem>>, %arg11: memref<18x18x8xf32, #tpu.memory_space<vmem>>) attributes {dimension_semantics = [#tpu.dimension_semantics<parallel>], iteration_bounds = array<i64: 2>, scalar_prefetch = 0 : i64, scratch_operands = 1 : i64, tpu.core_type = #tpu.core_type<tc>, window_params = [{transform_indices = @transform_0, window_bounds = array<i64: 1, 16, 16, 4>}, {pipeline_mode = #tpu.pipeline_mode<synchronous>, transform_indices = @transform_1, window_bounds = array<i64: 4, 8>}, {pipeline_mode = #tpu.pipeline_mode<synchronous>, transform_indices = @transform_2, window_bounds = array<i64: 1, 8>}, {pipeline_mode = #tpu.pipeline_mode<synchronous>, transform_indices = @transform_3, window_bounds = array<i64: 3, 3, 8>}, {pipeline_mode = #tpu.pipeline_mode<synchronous>, transform_indices = @transform_4, window_bounds = array<i64: 1, 8>}, {pipeline_mode = #tpu.pipeline_mode<synchronous>, transform_indices = @transform_5, window_bounds = array<i64: 8, 8>}, {pipeline_mode = #tpu.pipeline_mode<synchronous>, transform_indices = @transform_6, window_bounds = array<i64: 1, 8>}, {pipeline_mode = #tpu.pipeline_mode<synchronous>, transform_indices = @transform_7, window_bounds = array<i64: 4, 8>}, {pipeline_mode = #tpu.pipeline_mode<synchronous>, transform_indices = @transform_8, window_bounds = array<i64: 1, 8>}, {transform_indices = @transform_9, window_bounds = array<i64: 1, 16, 16, 8>}]} {
    %cst = arith.constant 0.000000e+00 : f32
    %0 = vector.broadcast %cst : f32 to vector<18x18x8xf32>
    %c0 = arith.constant 0 : index
    %c0_0 = arith.constant 0 : index
    %c0_1 = arith.constant 0 : index
    %1 = vector.load %arg11[%c0, %c0_0, %c0_1] : memref<18x18x8xf32, #tpu.memory_space<vmem>>, vector<18x18x8xf32>
    tpu.vector_store %arg11[%c0, %c0_0, %c0_1], %0 {strides = array<i32>} : memref<18x18x8xf32, #tpu.memory_space<vmem>>, vector<18x18x8xf32>,
    %c0_2 = arith.constant 0 : index
    %c0_3 = arith.constant 0 : index
    %c0_4 = arith.constant 0 : index
    %c0_5 = arith.constant 0 : index
    %2 = vector.load %arg1[%c0_2, %c0_3, %c0_4, %c0_5] : memref<1x16x16x4xf32, #tpu.memory_space<vmem>>, vector<1x16x16x4xf32>
    %3 = vector.shape_cast %2 : vector<1x16x16x4xf32> to vector<16x16x4xf32>
    %4 = vector.shape_cast %3 : vector<16x16x4xf32> to vector<256x4xf32>
    %c0_6 = arith.constant 0 : index
    %c0_7 = arith.constant 0 : index
    %5 = vector.load %arg2[%c0_6, %c0_7] : memref<4x8xf32, #tpu.memory_space<vmem>>, vector<4x8xf32>
    %cst_8 = arith.constant dense<0.000000e+00> : vector<256x8xf32>
    %6 = tpu.matmul %4, %5, %cst_8 {dimension_numbers = #tpu.dot_dimension_numbers<[1], [0], [0], [1], [0, 0, 1, 1], [], []>} : vector<256x4xf32>, vector<4x8xf32>, vector<256x8xf32> -> vector<256x8xf32>
    %c0_9 = arith.constant 0 : index
    %c0_10 = arith.constant 0 : index
    %7 = vector.load %arg3[%c0_9, %c0_10] : memref<1x8xf32, #tpu.memory_space<vmem>>, vector<1x8xf32>
    %8 = vector.broadcast %7 : vector<1x8xf32> to vector<256x8xf32>
    %9 = arith.addf %6, %8 : vector<256x8xf32>
    %cst_11 = arith.constant 0.000000e+00 : f32
    %10 = vector.broadcast %cst_11 : f32 to vector<256x8xf32>
    %11 = arith.maximumf %9, %10 : vector<256x8xf32>
    %12 = vector.shape_cast %11 : vector<256x8xf32> to vector<16x16x8xf32>
    %c1 = arith.constant 1 : index
    %c1_12 = arith.constant 1 : index
    %c0_13 = arith.constant 0 : index
    %13 = vector.load %arg11[%c1, %c1_12, %c0_13] : memref<18x18x8xf32, #tpu.memory_space<vmem>>, vector<16x16x8xf32>
    tpu.vector_store %arg11[%c1, %c1_12, %c0_13], %12 {strides = array<i32>} : memref<18x18x8xf32, #tpu.memory_space<vmem>>, vector<16x16x8xf32>,
    %c0_14 = arith.constant 0 : index
    %c0_15 = arith.constant 0 : index
    %c0_16 = arith.constant 0 : index
    %14 = vector.load %arg4[%c0_14, %c0_15, %c0_16] : memref<3x3x8xf32, #tpu.memory_space<vmem>>, vector<3x3x8xf32>
    %cst_17 = arith.constant 0.000000e+00 : f32
    %15 = vector.broadcast %cst_17 : f32 to vector<16x16x8xf32>
    %c0_18 = arith.constant 0 : index
    %c0_19 = arith.constant 0 : index
    %c0_20 = arith.constant 0 : index
    %16 = vector.load %arg11[%c0_18, %c0_19, %c0_20] : memref<18x18x8xf32, #tpu.memory_space<vmem>>, vector<16x16x8xf32>
    %17 = vector.extract_strided_slice %14 {offsets = [0, 0, 0], sizes = [1, 1, 8], strides = [1, 1, 1]} : vector<3x3x8xf32> to vector<1x1x8xf32>
    %18 = vector.shape_cast %17 : vector<1x1x8xf32> to vector<8xf32>
    %19 = vector.shape_cast %18 : vector<8xf32> to vector<1x1x8xf32>
    %20 = vector.broadcast %19 : vector<1x1x8xf32> to vector<16x16x8xf32>
    %21 = arith.mulf %16, %20 : vector<16x16x8xf32>
    %22 = arith.addf %15, %21 : vector<16x16x8xf32>
    %c0_21 = arith.constant 0 : index
    %c1_22 = arith.constant 1 : index
    %c0_23 = arith.constant 0 : index
    %23 = vector.load %arg11[%c0_21, %c1_22, %c0_23] : memref<18x18x8xf32, #tpu.memory_space<vmem>>, vector<16x16x8xf32>
    %24 = vector.extract_strided_slice %14 {offsets = [0, 1, 0], sizes = [1, 1, 8], strides = [1, 1, 1]} : vector<3x3x8xf32> to vector<1x1x8xf32>
    %25 = vector.shape_cast %24 : vector<1x1x8xf32> to vector<8xf32>
    %26 = vector.shape_cast %25 : vector<8xf32> to vector<1x1x8xf32>
    %27 = vector.broadcast %26 : vector<1x1x8xf32> to vector<16x16x8xf32>
    %28 = arith.mulf %23, %27 : vector<16x16x8xf32>
    %29 = arith.addf %22, %28 : vector<16x16x8xf32>
    %c0_24 = arith.constant 0 : index
    %c2 = arith.constant 2 : index
    %c0_25 = arith.constant 0 : index
    %30 = vector.load %arg11[%c0_24, %c2, %c0_25] : memref<18x18x8xf32, #tpu.memory_space<vmem>>, vector<16x16x8xf32>
    %31 = vector.extract_strided_slice %14 {offsets = [0, 2, 0], sizes = [1, 1, 8], strides = [1, 1, 1]} : vector<3x3x8xf32> to vector<1x1x8xf32>
    %32 = vector.shape_cast %31 : vector<1x1x8xf32> to vector<8xf32>
    %33 = vector.shape_cast %32 : vector<8xf32> to vector<1x1x8xf32>
    %34 = vector.broadcast %33 : vector<1x1x8xf32> to vector<16x16x8xf32>
    %35 = arith.mulf %30, %34 : vector<16x16x8xf32>
    %36 = arith.addf %29, %35 : vector<16x16x8xf32>
    %c1_26 = arith.constant 1 : index
    %c0_27 = arith.constant 0 : index
    %c0_28 = arith.constant 0 : index
    %37 = vector.load %arg11[%c1_26, %c0_27, %c0_28] : memref<18x18x8xf32, #tpu.memory_space<vmem>>, vector<16x16x8xf32>
    %38 = vector.extract_strided_slice %14 {offsets = [1, 0, 0], sizes = [1, 1, 8], strides = [1, 1, 1]} : vector<3x3x8xf32> to vector<1x1x8xf32>
    %39 = vector.shape_cast %38 : vector<1x1x8xf32> to vector<8xf32>
    %40 = vector.shape_cast %39 : vector<8xf32> to vector<1x1x8xf32>
    %41 = vector.broadcast %40 : vector<1x1x8xf32> to vector<16x16x8xf32>
    %42 = arith.mulf %37, %41 : vector<16x16x8xf32>
    %43 = arith.addf %36, %42 : vector<16x16x8xf32>
    %c1_29 = arith.constant 1 : index
    %c1_30 = arith.constant 1 : index
    %c0_31 = arith.constant 0 : index
    %44 = vector.load %arg11[%c1_29, %c1_30, %c0_31] : memref<18x18x8xf32, #tpu.memory_space<vmem>>, vector<16x16x8xf32>
    %45 = vector.extract_strided_slice %14 {offsets = [1, 1, 0], sizes = [1, 1, 8], strides = [1, 1, 1]} : vector<3x3x8xf32> to vector<1x1x8xf32>
    %46 = vector.shape_cast %45 : vector<1x1x8xf32> to vector<8xf32>
    %47 = vector.shape_cast %46 : vector<8xf32> to vector<1x1x8xf32>
    %48 = vector.broadcast %47 : vector<1x1x8xf32> to vector<16x16x8xf32>
    %49 = arith.mulf %44, %48 : vector<16x16x8xf32>
    %50 = arith.addf %43, %49 : vector<16x16x8xf32>
    %c1_32 = arith.constant 1 : index
    %c2_33 = arith.constant 2 : index
    %c0_34 = arith.constant 0 : index
    %51 = vector.load %arg11[%c1_32, %c2_33, %c0_34] : memref<18x18x8xf32, #tpu.memory_space<vmem>>, vector<16x16x8xf32>
    %52 = vector.extract_strided_slice %14 {offsets = [1, 2, 0], sizes = [1, 1, 8], strides = [1, 1, 1]} : vector<3x3x8xf32> to vector<1x1x8xf32>
    %53 = vector.shape_cast %52 : vector<1x1x8xf32> to vector<8xf32>
    %54 = vector.shape_cast %53 : vector<8xf32> to vector<1x1x8xf32>
    %55 = vector.broadcast %54 : vector<1x1x8xf32> to vector<16x16x8xf32>
    %56 = arith.mulf %51, %55 : vector<16x16x8xf32>
    %57 = arith.addf %50, %56 : vector<16x16x8xf32>
    %c2_35 = arith.constant 2 : index
    %c0_36 = arith.constant 0 : index
    %c0_37 = arith.constant 0 : index
    %58 = vector.load %arg11[%c2_35, %c0_36, %c0_37] : memref<18x18x8xf32, #tpu.memory_space<vmem>>, vector<16x16x8xf32>
    %59 = vector.extract_strided_slice %14 {offsets = [2, 0, 0], sizes = [1, 1, 8], strides = [1, 1, 1]} : vector<3x3x8xf32> to vector<1x1x8xf32>
    %60 = vector.shape_cast %59 : vector<1x1x8xf32> to vector<8xf32>
    %61 = vector.shape_cast %60 : vector<8xf32> to vector<1x1x8xf32>
    %62 = vector.broadcast %61 : vector<1x1x8xf32> to vector<16x16x8xf32>
    %63 = arith.mulf %58, %62 : vector<16x16x8xf32>
    %64 = arith.addf %57, %63 : vector<16x16x8xf32>
    %c2_38 = arith.constant 2 : index
    %c1_39 = arith.constant 1 : index
    %c0_40 = arith.constant 0 : index
    %65 = vector.load %arg11[%c2_38, %c1_39, %c0_40] : memref<18x18x8xf32, #tpu.memory_space<vmem>>, vector<16x16x8xf32>
    %66 = vector.extract_strided_slice %14 {offsets = [2, 1, 0], sizes = [1, 1, 8], strides = [1, 1, 1]} : vector<3x3x8xf32> to vector<1x1x8xf32>
    %67 = vector.shape_cast %66 : vector<1x1x8xf32> to vector<8xf32>
    %68 = vector.shape_cast %67 : vector<8xf32> to vector<1x1x8xf32>
    %69 = vector.broadcast %68 : vector<1x1x8xf32> to vector<16x16x8xf32>
    %70 = arith.mulf %65, %69 : vector<16x16x8xf32>
    %71 = arith.addf %64, %70 : vector<16x16x8xf32>
    %c2_41 = arith.constant 2 : index
    %c2_42 = arith.constant 2 : index
    %c0_43 = arith.constant 0 : index
    %72 = vector.load %arg11[%c2_41, %c2_42, %c0_43] : memref<18x18x8xf32, #tpu.memory_space<vmem>>, vector<16x16x8xf32>
    %73 = vector.extract_strided_slice %14 {offsets = [2, 2, 0], sizes = [1, 1, 8], strides = [1, 1, 1]} : vector<3x3x8xf32> to vector<1x1x8xf32>
    %74 = vector.shape_cast %73 : vector<1x1x8xf32> to vector<8xf32>
    %75 = vector.shape_cast %74 : vector<8xf32> to vector<1x1x8xf32>
    %76 = vector.broadcast %75 : vector<1x1x8xf32> to vector<16x16x8xf32>
    %77 = arith.mulf %72, %76 : vector<16x16x8xf32>
    %78 = arith.addf %71, %77 : vector<16x16x8xf32>
    %79 = vector.shape_cast %78 : vector<16x16x8xf32> to vector<256x8xf32>
    %c0_44 = arith.constant 0 : index
    %c0_45 = arith.constant 0 : index
    %80 = vector.load %arg5[%c0_44, %c0_45] : memref<1x8xf32, #tpu.memory_space<vmem>>, vector<1x8xf32>
    %81 = vector.broadcast %80 : vector<1x8xf32> to vector<256x8xf32>
    %82 = arith.addf %79, %81 : vector<256x8xf32>
    %cst_46 = arith.constant 0.000000e+00 : f32
    %83 = vector.broadcast %cst_46 : f32 to vector<256x8xf32>
    %84 = arith.maximumf %82, %83 : vector<256x8xf32>
    %c0_47 = arith.constant 0 : index
    %c0_48 = arith.constant 0 : index
    %85 = vector.load %arg6[%c0_47, %c0_48] : memref<8x8xf32, #tpu.memory_space<vmem>>, vector<8x8xf32>
    %cst_49 = arith.constant dense<0.000000e+00> : vector<256x8xf32>
    %86 = tpu.matmul %84, %85, %cst_49 {dimension_numbers = #tpu.dot_dimension_numbers<[1], [0], [0], [1], [0, 0, 1, 1], [], []>} : vector<256x8xf32>, vector<8x8xf32>, vector<256x8xf32> -> vector<256x8xf32>
    %c0_50 = arith.constant 0 : index
    %c0_51 = arith.constant 0 : index
    %87 = vector.load %arg7[%c0_50, %c0_51] : memref<1x8xf32, #tpu.memory_space<vmem>>, vector<1x8xf32>
    %88 = vector.broadcast %87 : vector<1x8xf32> to vector<256x8xf32>
    %89 = arith.addf %86, %88 : vector<256x8xf32>
    %c0_52 = arith.constant 0 : index
    %c0_53 = arith.constant 0 : index
    %90 = vector.load %arg8[%c0_52, %c0_53] : memref<4x8xf32, #tpu.memory_space<vmem>>, vector<4x8xf32>
    %cst_54 = arith.constant dense<0.000000e+00> : vector<256x8xf32>
    %91 = tpu.matmul %4, %90, %cst_54 {dimension_numbers = #tpu.dot_dimension_numbers<[1], [0], [0], [1], [0, 0, 1, 1], [], []>} : vector<256x4xf32>, vector<4x8xf32>, vector<256x8xf32> -> vector<256x8xf32>
    %c0_55 = arith.constant 0 : index
    %c0_56 = arith.constant 0 : index
    %92 = vector.load %arg9[%c0_55, %c0_56] : memref<1x8xf32, #tpu.memory_space<vmem>>, vector<1x8xf32>
    %93 = vector.broadcast %92 : vector<1x8xf32> to vector<256x8xf32>
    %94 = arith.addf %91, %93 : vector<256x8xf32>
    %95 = arith.addf %89, %94 : vector<256x8xf32>
    %96 = vector.shape_cast %95 : vector<256x8xf32> to vector<1x16x16x8xf32>
    %c0_57 = arith.constant 0 : index
    %c0_58 = arith.constant 0 : index
    %c0_59 = arith.constant 0 : index
    %c0_60 = arith.constant 0 : index
    %97 = vector.load %arg10[%c0_57, %c0_58, %c0_59, %c0_60] : memref<1x16x16x8xf32, #tpu.memory_space<vmem>>, vector<1x16x16x8xf32>
    tpu.vector_store %arg10[%c0_57, %c0_58, %c0_59, %c0_60], %96 {strides = array<i32>} : memref<1x16x16x8xf32, #tpu.memory_space<vmem>>, vector<1x16x16x8xf32>,
    return
  }
  func.func @transform_0(%arg0: i32) -> (i32, i32, i32, i32) {
    %c0_i32 = arith.constant 0 : i32
    %c0_i32_0 = arith.constant 0 : i32
    %c0_i32_1 = arith.constant 0 : i32
    %c0_i32_2 = arith.constant 0 : i32
    return %arg0, %c0_i32, %c0_i32_0, %c0_i32_1 : i32, i32, i32, i32
  }
  func.func @transform_1(%arg0: i32) -> (i32, i32) {
    %c0_i32 = arith.constant 0 : i32
    %c0_i32_0 = arith.constant 0 : i32
    %c0_i32_1 = arith.constant 0 : i32
    return %c0_i32, %c0_i32_0 : i32, i32
  }
  func.func @transform_2(%arg0: i32) -> (i32, i32) {
    %c0_i32 = arith.constant 0 : i32
    %c0_i32_0 = arith.constant 0 : i32
    %c0_i32_1 = arith.constant 0 : i32
    return %c0_i32, %c0_i32_0 : i32, i32
  }
  func.func @transform_3(%arg0: i32) -> (i32, i32, i32) {
    %c0_i32 = arith.constant 0 : i32
    %c0_i32_0 = arith.constant 0 : i32
    %c0_i32_1 = arith.constant 0 : i32
    %c0_i32_2 = arith.constant 0 : i32
    return %c0_i32, %c0_i32_0, %c0_i32_1 : i32, i32, i32
  }
  func.func @transform_4(%arg0: i32) -> (i32, i32) {
    %c0_i32 = arith.constant 0 : i32
    %c0_i32_0 = arith.constant 0 : i32
    %c0_i32_1 = arith.constant 0 : i32
    return %c0_i32, %c0_i32_0 : i32, i32
  }
  func.func @transform_5(%arg0: i32) -> (i32, i32) {
    %c0_i32 = arith.constant 0 : i32
    %c0_i32_0 = arith.constant 0 : i32
    %c0_i32_1 = arith.constant 0 : i32
    return %c0_i32, %c0_i32_0 : i32, i32
  }
  func.func @transform_6(%arg0: i32) -> (i32, i32) {
    %c0_i32 = arith.constant 0 : i32
    %c0_i32_0 = arith.constant 0 : i32
    %c0_i32_1 = arith.constant 0 : i32
    return %c0_i32, %c0_i32_0 : i32, i32
  }
  func.func @transform_7(%arg0: i32) -> (i32, i32) {
    %c0_i32 = arith.constant 0 : i32
    %c0_i32_0 = arith.constant 0 : i32
    %c0_i32_1 = arith.constant 0 : i32
    return %c0_i32, %c0_i32_0 : i32, i32
  }
  func.func @transform_8(%arg0: i32) -> (i32, i32) {
    %c0_i32 = arith.constant 0 : i32
    %c0_i32_0 = arith.constant 0 : i32
    %c0_i32_1 = arith.constant 0 : i32
    return %c0_i32, %c0_i32_0 : i32, i32
  }
  func.func @transform_9(%arg0: i32) -> (i32, i32, i32, i32) {
    %c0_i32 = arith.constant 0 : i32
    %c0_i32_0 = arith.constant 0 : i32
    %c0_i32_1 = arith.constant 0 : i32
    %c0_i32_2 = arith.constant 0 : i32
    return %arg0, %c0_i32, %c0_i32_0, %c0_i32_1 : i32, i32, i32, i32
  }
}

</mosaic_0001>

<bundles_post_ra>
// kernel: block_forward.1
= control target key start
LH: loop header
LB: loop body
LE: loop exit
PB: predicated region body
PF: predicated region fallthrough
CT: control target
= control target key end

     0   :  { %s3043_s30 = smov 0   ;;  %s4150_s0 = inlined_call_operand.vmem [shape: f32[2,16,16,4], index: 0, kind: input, shape index: {}]   ;;  %s4151_s1 = inlined_call_operand.vmem [shape: f32[4,8], index: 1, kind: input, shape index: {}]   ;;  %s4152_s2 = inlined_call_operand.vmem [shape: f32[1,8], index: 2, kind: input, shape index: {}]   ;;  %s4153_s3 = inlined_call_operand.vmem [shape: f32[3,3,8], index: 3, kind: input, shape index: {}]   ;;  %s4154_s4 = inlined_call_operand.vmem [shape: f32[1,8], index: 4, kind: input, shape index: {}]   ;;  %s4155_s5 = inlined_call_operand.vmem [shape: f32[8,8], index: 5, kind: input, shape index: {}]   ;;  %s4156_s6 = inlined_call_operand.vmem [shape: f32[1,8], index: 6, kind: input, shape index: {}]   ;;  %s4157_s7 = inlined_call_operand.vmem [shape: f32[4,8], index: 7, kind: input, shape index: {}]   ;;  %s4158_s8 = inlined_call_operand.vmem [shape: f32[1,8], index: 8, kind: input, shape index: {}]   ;;  %s4159_s9 = inlined_call_operand.vmem [shape: f32[2,16,16,8], index: 9, kind: output, shape index: {}]  }
   0x1 LB: > { %s2479_s10 = sadd.s32 4294967295, %s2990_s30   ;;  %p2483_p0 = scmp.ge.s32.totalorder %s2990_s30, 1  ;;  %s2990_s30 = sphi %s3043_s30, %s19_s30  }
   0x2   : > { %p287_p1 = scmp.lt.s32.totalorder %s2990_s30, 3 }
   0x4   : > { %p288_p2 = pnand %p2483_p0, %p287_p1 }
   0x5   : > { %v421_v0 = vld [vmem:[%s4151_s1] sm:$0xf] (!%p288_p2)  ;;  %vm526_vm0 = vcmask (!%p288_p2), 1043456   ;;  %p323_p3 = scmp.lt.s32.totalorder (!%p288_p2), %s2479_s10, 1  ;;  %vm333_vm1 = vcmask (!%p288_p2), 64512   ;;  %vm336_vm2 = vcmask (!%p288_p2), 58368   ;;  %v855_v35 = vlaneseq (!%p288_p2) }
   0x6   : > { %291 = sbr.rel (%p288_p2) target bundleno = 696 (0x2b8), region = 56  ;;  %2693 = vmatprep.subr.msk.mxu0 (!%p288_p2), %vm526_vm0, %v421_v0  ;;  %v2992_v1 = vmov (!%p288_p2), 0.0   ;;  %vm429_vm3 = vcmask (!%p288_p2), 31744   ;;  %v1795_v34 = vld [vmem:[%s4155_s5] sm:$0xff] (!%p288_p2) }
   0x7   : > { %2694 = vmatpush3.msk.msra.mxu0 (!%p288_p2), %vm526_vm0, %v421_v0  ;;  %339 = vst.msk [vmem:[#allocation2 + $0x20] sm:$0xff] (!%p288_p2), %vm333_vm1, %v2992_v1  ;;  %334 = vst.msk [vmem:[#allocation2] sm:$0xff] (!%p288_p2), %vm333_vm1, %v2992_v1  ;;  %2843 = vmatprep.subr.mxu1 (!%p288_p2), %v1795_v34  ;;  %v2124_v36 = vld [vmem:[%s4157_s7] sm:$0xf] (!%p288_p2)  ;;  %v856_v37 = vshrl.u32 (!%p288_p2), %v855_v35, 7 }
   0x8   : > { %340 = vst.msk [vmem:[#allocation2 + $0x28] sm:$0x3] (!%p288_p2), %vm336_vm2, %v2992_v1  ;;  %337 = vst.msk [vmem:[#allocation2 + $0x10] sm:$0x3] (!%p288_p2), %vm336_vm2, %v2992_v1  ;;  %2743 = vmatprep.subr.mxu0 (!%p288_p2), %v1795_v34  ;;  %2844 = vmatpush3.msra.mxu1 (!%p288_p2), %v1795_v34  ;;  %v820_v40 = vld [vmem:[%s4153_s3] sm:$0x7] (!%p288_p2) }
   0x9   : > { %335 = vst.msk [vmem:[#allocation2 + $0x8] sm:$0xff] (!%p288_p2), %vm333_vm1, %v2992_v1  ;;  %338 = vst.msk [vmem:[#allocation2 + $0x18] sm:$0xff] (!%p288_p2), %vm333_vm1, %v2992_v1  ;;  %2793 = vmatprep.subr.msk.mxu1 (!%p288_p2), %vm526_vm0, %v2124_v36  ;;  %v3191_v38 = vsub.s32 (!%p288_p2), 0, %v856_v37  ;;  %v957_v39 = vsub.s32 (!%p288_p2), 1, %v856_v37  ;;  %v3199_v41 = vld [vmem:[%s4152_s2] ss:$0 sm:$0xff] (!%p288_p2) }
   0xa   : > { %341 = vst.msk [vmem:[#allocation2 + $0x30] sm:$0xff] (!%p288_p2), %vm333_vm1, %v2992_v1  ;;  %342 = vst.msk [vmem:[#allocation2 + $0x38] sm:$0xff] (!%p288_p2), %vm333_vm1, %v2992_v1  ;;  %v1057_v45 = vsub.s32 (!%p288_p2), 2, %v856_v37 }
   0xb   : > { %343 = vst.msk [vmem:[#allocation2 + $0x40] sm:$0x3] (!%p288_p2), %vm336_vm2, %v2992_v1  ;;  %346 = vst.msk [vmem:[#allocation2 + $0x58] sm:$0x3] (!%p288_p2), %vm336_vm2, %v2992_v1  ;;  %v3202_v43 = vrot.slane (!%p288_p2), %v820_v40, %v3191_v38  ;;  %v3204_v44 = vrot.slane (!%p288_p2), %v820_v40, %v957_v39 }
   0xc   : > { %344 = vst.msk [vmem:[#allocation2 + $0x48] sm:$0xff] (!%p288_p2), %vm333_vm1, %v2992_v1  ;;  %345 = vst.msk [vmem:[#allocation2 + $0x50] sm:$0xff] (!%p288_p2), %vm333_vm1, %v2992_v1  ;;  %v3210_v58 = vrot.slane (!%p288_p2), %v820_v40, %v1057_v45 }
   0xd   : > { %s4161_s10 = smov (!%p323_p3, %s2479_s10), 1  ;;  %347 = vst.msk [vmem:[#allocation2 + $0x60] sm:$0xff] %vm333_vm1, %v2992_v1  ;;  %348 = vst.msk [vmem:[#allocation2 + $0x68] sm:$0xff] %vm333_vm1, %v2992_v1 }
   0xe   : > { %349 = vst.msk [vmem:[#allocation2 + $0x70] sm:$0x3] %vm336_vm2, %v2992_v1  ;;  %352 = vst.msk [vmem:[#allocation2 + $0x88] sm:$0x3] %vm336_vm2, %v2992_v1  ;;  %s2592_s13 = sshll.u32 %s4161_s10, 8  ;;  %v823_v48 = vld [vmem:[#allocation2] sm:$0xff] }
   0xf   : > { %350 = vst.msk [vmem:[#allocation2 + $0x78] sm:$0xff] %vm333_vm1, %v2992_v1  ;;  %351 = vst.msk [vmem:[#allocation2 + $0x80] sm:$0xff] %vm333_vm1, %v2992_v1  ;;  %s3118_s16 = scalar_lea.vmem %s4150_s0, %s2592_s13  ;;  %v859_v56 = vmul.f32 %v3202_v43, %v823_v48  ;;  %s4049_s23 = scalar_lea.vmem %s4159_s9, %s2592_s13 }
  0x10   : > { %353 = vst.msk [vmem:[#allocation2 + $0x90] sm:$0xff] %vm333_vm1, %v2992_v1  ;;  %354 = vst.msk [vmem:[#allocation2 + $0x98] sm:$0xff] %vm333_vm1, %v2992_v1  ;;  %v389_v2 = vld [vmem:[%s3118_s16] sm:$0xff]  ;;  %v390_v3 = vld [vmem:[%s3118_s16 + $0x8] sm:$0xff] }
  0x11   : > { %355 = vst.msk [vmem:[#allocation2 + $0xa0] sm:$0x3] %vm336_vm2, %v2992_v1  ;;  %358 = vst.msk [vmem:[#allocation2 + $0xb8] sm:$0x3] %vm336_vm2, %v2992_v1  ;;  %v391_v4 = vld [vmem:[%s3118_s16 + $0x10] sm:$0xff]  ;;  %2695 = vmatprep.mubr.msk.f32.mxu0 %vm429_vm3, %v389_v2  ;;  %v392_v5 = vld [vmem:[%s3118_s16 + $0x18] sm:$0xff] }
  0x12   : > { %356 = vst.msk [vmem:[#allocation2 + $0xa8] sm:$0xff] %vm333_vm1, %v2992_v1  ;;  %357 = vst.msk [vmem:[#allocation2 + $0xb0] sm:$0xff] %vm333_vm1, %v2992_v1  ;;  %2696 = vmatmul.mubr.msk.f32.vlgmr.msra.gmra.mrb[0].mxu0 %vm429_vm3, %v390_v3  ;;  %v393_v6 = vld [vmem:[%s3118_s16 + $0x20] sm:$0xff]  ;;  %v394_v7 = vld [vmem:[%s3118_s16 + $0x28] sm:$0xff] }
  0x13   : > { %359 = vst.msk [vmem:[#allocation2 + $0xc0] sm:$0xff] %vm333_vm1, %v2992_v1  ;;  %360 = vst.msk [vmem:[#allocation2 + $0xc8] sm:$0xff] %vm333_vm1, %v2992_v1  ;;  %2698 = vmatprep.mubr.msk.f32.mxu0 %vm429_vm3, %v391_v4  ;;  %v395_v8 = vld [vmem:[%s3118_s16 + $0x30] sm:$0xff]  ;;  %v396_v9 = vld [vmem:[%s3118_s16 + $0x38] sm:$0xff]  ;;  %2744 = vmatpush3.msra.mxu0 %v1795_v34 }
  0x14   : > { %361 = vst.msk [vmem:[#allocation2 + $0xd0] sm:$0x3] %vm336_vm2, %v2992_v1  ;;  %364 = vst.msk [vmem:[#allocation2 + $0xe8] sm:$0x3] %vm336_vm2, %v2992_v1  ;;  %v397_v10 = vld [vmem:[%s3118_s16 + $0x40] sm:$0xff]  ;;  %v398_v11 = vld [vmem:[%s3118_s16 + $0x48] sm:$0xff] }
  0x15   : > { %362 = vst.msk [vmem:[#allocation2 + $0xd8] sm:$0xff] %vm333_vm1, %v2992_v1  ;;  %363 = vst.msk [vmem:[#allocation2 + $0xe0] sm:$0xff] %vm333_vm1, %v2992_v1  ;;  %v399_v12 = vld [vmem:[%s3118_s16 + $0x50] sm:$0xff]  ;;  %v400_v13 = vld [vmem:[%s3118_s16 + $0x58] sm:$0xff] }
  0x16   : > { %365 = vst.msk [vmem:[#allocation2 + $0xf0] sm:$0xff] %vm333_vm1, %v2992_v1  ;;  %366 = vst.msk [vmem:[#allocation2 + $0xf8] sm:$0xff] %vm333_vm1, %v2992_v1  ;;  %2699 = vmatmul.mubr.msk.f32.gmra.mrb[2].mxu0 %vm429_vm3, %v392_v5  ;;  %v401_v14 = vld [vmem:[%s3118_s16 + $0x60] sm:$0xff]  ;;  %v402_v15 = vld [vmem:[%s3118_s16 + $0x68] sm:$0xff] }
  0x17   : > { %367 = vst.msk [vmem:[#allocation2 + $0x100] sm:$0x3] %vm336_vm2, %v2992_v1  ;;  %370 = vst.msk [vmem:[#allocation2 + $0x118] sm:$0x3] %vm336_vm2, %v2992_v1  ;;  %2701 = vmatprep.mubr.msk.f32.mxu0 %vm429_vm3, %v393_v6  ;;  %v403_v16 = vld [vmem:[%s3118_s16 + $0x70] sm:$0xff]  ;;  %v404_v17 = vld [vmem:[%s3118_s16 + $0x78] sm:$0xff] }
  0x18   : > { %368 = vst.msk [vmem:[#allocation2 + $0x108] sm:$0xff] %vm333_vm1, %v2992_v1  ;;  %369 = vst.msk [vmem:[#allocation2 + $0x110] sm:$0xff] %vm333_vm1, %v2992_v1  ;;  %v405_v18 = vld [vmem:[%s3118_s16 + $0x80] sm:$0xff]  ;;  %v406_v19 = vld [vmem:[%s3118_s16 + $0x88] sm:$0xff] }
  0x19   : > { %371 = vst.msk [vmem:[#allocation2 + $0x120] sm:$0xff] %vm333_vm1, %v2992_v1  ;;  %372 = vst.msk [vmem:[#allocation2 + $0x128] sm:$0xff] %vm333_vm1, %v2992_v1  ;;  %v407_v20 = vld [vmem:[%s3118_s16 + $0x90] sm:$0xff]  ;;  %v408_v21 = vld [vmem:[%s3118_s16 + $0x98] sm:$0xff] }
  0x1a   : > { %373 = vst.msk [vmem:[#allocation2 + $0x130] sm:$0x3] %vm336_vm2, %v2992_v1  ;;  %376 = vst.msk [vmem:[#allocation2 + $0x148] sm:$0x3] %vm336_vm2, %v2992_v1  ;;  %2702 = vmatmul.mubr.msk.f32.gmra.mrb[4].mxu0 %vm429_vm3, %v394_v7  ;;  %v409_v22 = vld [vmem:[%s3118_s16 + $0xa0] sm:$0xff]  ;;  %v410_v23 = vld [vmem:[%s3118_s16 + $0xa8] sm:$0xff] }
  0x1b   : > { %374 = vst.msk [vmem:[#allocation2 + $0x138] sm:$0xff] %vm333_vm1, %v2992_v1  ;;  %375 = vst.msk [vmem:[#allocation2 + $0x140] sm:$0xff] %vm333_vm1, %v2992_v1  ;;  %2704 = vmatprep.mubr.msk.f32.mxu0 %vm429_vm3, %v395_v8  ;;  %v411_v24 = vld [vmem:[%s3118_s16 + $0xb0] sm:$0xff]  ;;  %v412_v25 = vld [vmem:[%s3118_s16 + $0xb8] sm:$0xff] }
  0x1c   : > { %377 = vst.msk [vmem:[#allocation2 + $0x150] sm:$0xff] %vm333_vm1, %v2992_v1  ;;  %378 = vst.msk [vmem:[#allocation2 + $0x158] sm:$0xff] %vm333_vm1, %v2992_v1  ;;  %v413_v26 = vld [vmem:[%s3118_s16 + $0xc0] sm:$0xff]  ;;  %v414_v27 = vld [vmem:[%s3118_s16 + $0xc8] sm:$0xff] }
  0x1d   : > { %379 = vst.msk [vmem:[#allocation2 + $0x160] sm:$0x3] %vm336_vm2, %v2992_v1  ;;  %382 = vst.msk [vmem:[#allocation2 + $0x178] sm:$0x3] %vm336_vm2, %v2992_v1  ;;  %v415_v28 = vld [vmem:[%s3118_s16 + $0xd0] sm:$0xff]  ;;  %v416_v29 = vld [vmem:[%s3118_s16 + $0xd8] sm:$0xff] }
  0x1e   : > { %380 = vst.msk [vmem:[#allocation2 + $0x168] sm:$0xff] %vm333_vm1, %v2992_v1  ;;  %381 = vst.msk [vmem:[#allocation2 + $0x170] sm:$0xff] %vm333_vm1, %v2992_v1  ;;  %2705 = vmatmul.mubr.msk.f32.gmra.mrb[6].mxu0 %vm429_vm3, %v396_v9  ;;  %v417_v30 = vld [vmem:[%s3118_s16 + $0xe0] sm:$0xff]  ;;  %v418_v31 = vld [vmem:[%s3118_s16 + $0xe8] sm:$0xff] }
  0x1f   : > { %383 = vst.msk [vmem:[#allocation2 + $0x180] sm:$0xff] %vm333_vm1, %v2992_v1  ;;  %384 = vst.msk [vmem:[#allocation2 + $0x188] sm:$0xff] %vm333_vm1, %v2992_v1  ;;  %2707 = vmatprep.mubr.msk.f32.mxu0 %vm429_vm3, %v397_v10  ;;  %v419_v32 = vld [vmem:[%s3118_s16 + $0xf0] sm:$0xff]  ;;  %v420_v33 = vld [vmem:[%s3118_s16 + $0xf8] sm:$0xff] }
  0x20   : > { %385 = vst.msk [vmem:[#allocation2 + $0x190] sm:$0x3] %vm336_vm2, %v2992_v1  ;;  %388 = vst.msk [vmem:[#allocation2 + $0x1a8] sm:$0x3] %vm336_vm2, %v2992_v1  ;;  %v923_v49 = vld [vmem:[#allocation2 + $0x1] sm:$0xff]  ;;  %v924_v52 = vld [vmem:[#allocation2 + $0x9] sm:$0xff] }
  0x21   : > { %386 = vst.msk [vmem:[#allocation2 + $0x198] sm:$0xff] %vm333_vm1, %v2992_v1  ;;  %387 = vst.msk [vmem:[#allocation2 + $0x1a0] sm:$0xff] %vm333_vm1, %v2992_v1  ;;  %v824_v51 = vld [vmem:[#allocation2 + $0x8] sm:$0xff]  ;;  %v959_v57 = vmul.f32 %v3204_v44, %v923_v49  ;;  %v960_v63 = vmul.f32 %v3204_v44, %v924_v52  ;;  %v821_v3 = vld [vmem:[%s4153_s3 + $0x4] sm:$0x7] }
  0x22   : > { %2708 = vmatmul.mubr.msk.f32.gmra.mrb[8].mxu0 %vm429_vm3, %v398_v11  ;;  %v1023_v61 = vld [vmem:[#allocation2 + $0x2] sm:$0xff]  ;;  %v860_v62 = vmul.f32 %v3202_v43, %v824_v51  ;;  %v1024_v1 = vld [vmem:[#allocation2 + $0xa] sm:$0xff] }
  0x23   : > { %2710 = vmatprep.mubr.msk.f32.mxu0 %vm429_vm3, %v399_v12  ;;  %v991_v6 = vadd.f32 %v959_v57, %v859_v56  ;;  %v1059_v7 = vmul.f32 %v3210_v58, %v1023_v61  ;;  %v1060_v11 = vmul.f32 %v3210_v58, %v1024_v1 }
  0x24   : > { %v992_v10 = vadd.f32 %v960_v63, %v860_v62 }
  0x26   : > { %2711 = vmatmul.mubr.msk.f32.gmra.mrb[10].mxu0 %vm429_vm3, %v400_v13  ;;  %v822_v13 = vld [vmem:[%s4153_s3 + $0x8] sm:$0x7] }
  0x27   : > { %2713 = vmatprep.mubr.msk.f32.mxu0 %vm429_vm3, %v401_v14  ;;  %v3231_v14 = vrot.slane %v821_v3, %v3191_v38 }
  0x2a   : > { %2714 = vmatmul.mubr.msk.f32.gmra.mrb[12].mxu0 %vm429_vm3, %v402_v15  ;;  %v3233_v15 = vrot.slane %v821_v3, %v957_v39 }
  0x2b   : > { %2716 = vmatprep.mubr.msk.f32.mxu0 %vm429_vm3, %v403_v16 }
  0x2e   : > { %2717 = vmatmul.mubr.msk.f32.gmra.mrb[14].mxu0 %vm429_vm3, %v404_v17  ;;  %v3235_v17 = vrot.slane %v821_v3, %v1057_v45 }
  0x2f   : > { %2719 = vmatprep.mubr.msk.f32.mxu0 %vm429_vm3, %v405_v18 }
  0x32   : > { %2720 = vmatmul.mubr.msk.f32.gmra.mrb[16].mxu0 %vm429_vm3, %v406_v19 }
  0x33   : > { %2722 = vmatprep.mubr.msk.f32.mxu0 %vm429_vm3, %v407_v20  ;;  %v1091_v20 = vadd.f32 %v1059_v7, %v991_v6 }
  0x36   : > { %2723 = vmatmul.mubr.msk.f32.gmra.mrb[18].mxu0 %vm429_vm3, %v408_v21 }
  0x37   : > { %2725 = vmatprep.mubr.msk.f32.mxu0 %vm429_vm3, %v409_v22 }
  0x3a   : > { %2726 = vmatmul.mubr.msk.f32.gmra.mrb[20].mxu0 %vm429_vm3, %v410_v23 }
  0x3b   : > { %2728 = vmatprep.mubr.msk.f32.mxu0 %vm429_vm3, %v411_v24 }
  0x3e   : > { %2729 = vmatmul.mubr.msk.f32.gmra.mrb[22].mxu0 %vm429_vm3, %v412_v25 }
  0x3f   : > { %2731 = vmatprep.mubr.msk.f32.mxu0 %vm429_vm3, %v413_v26 }
  0x42   : > { %2732 = vmatmul.mubr.msk.f32.gmra.mrb[24].mxu0 %vm429_vm3, %v414_v27  ;;  %v3241_v27 = vrot.slane %v822_v13, %v957_v39 }
  0x43   : > { %2734 = vmatprep.mubr.msk.f32.mxu0 %vm429_vm3, %v415_v28  ;;  %v3243_v28 = vrot.slane %v822_v13, %v1057_v45 }
  0x46   : > { %2735 = vmatmul.mubr.msk.f32.gmra.mrb[26].mxu0 %vm429_vm3, %v416_v29  ;;  %v1092_v29 = vadd.f32 %v1060_v11, %v992_v10 }
  0x47   : > { %2737 = vmatprep.mubr.msk.f32.mxu0 %vm429_vm3, %v417_v30 }
  0x4a   : > { %2738 = vmatmul.mubr.msk.f32.gmra.mrb[28].mxu0 %vm429_vm3, %v418_v31 }
  0x4b   : > { %2740 = vmatprep.mubr.msk.f32.mxu0 %vm429_vm3, %v419_v32 }
  0x4e   : > { %2741 = vmatmul.mubr.msk.f32.gmra.mrb[30].mxu0 %vm429_vm3, %v420_v33  ;;  %v3249_v33 = vrot.slane %v822_v13, %v3191_v38 }
  0xe5   : > { %v2697_v42 = vpop.f32.mrb[0].mxu0 }
  0xe6   : > { %v602_v46 = vadd.f32 %v2697_v42, %v3199_v41  ;;  %v596_v47 = vpop.f32.mrb[1].mxu0 }
  0xe7   : > { %v597_v50 = vadd.f32 %v3199_v41, %v596_v47 }
  0xe8   : > { %v756_v53 = vmax.f32 %v602_v46, 0.0 }
  0xe9   : > { %v755_v54 = vmax.f32 %v597_v50, 0.0  ;;  %v2700_v55 = vpop.f32.mrb[2].mxu0 }
  0xea   : > { %789 = vst.msk [vmem:[#allocation2 + $0x21] sm:$0xff] %vm333_vm1, %v756_v53  ;;  %v612_v59 = vadd.f32 %v2700_v55, %v3199_v41  ;;  %v606_v60 = vpop.f32.mrb[3].mxu0 }
  0xeb   : > { %788 = vst.msk [vmem:[#allocation2 + $0x19] sm:$0xff] %vm333_vm1, %v755_v54  ;;  %v607_v0 = vadd.f32 %v3199_v41, %v606_v60 }
  0xec   : > { %v758_v2 = vmax.f32 %v612_v59, 0.0 }
  0xed   : > { %v757_v4 = vmax.f32 %v607_v0, 0.0  ;;  %v2703_v5 = vpop.f32.mrb[4].mxu0 }
  0xee   : > { %791 = vst.msk [vmem:[#allocation2 + $0x39] sm:$0xff] %vm333_vm1, %v758_v2  ;;  %v622_v8 = vadd.f32 %v2703_v5, %v3199_v41  ;;  %v616_v9 = vpop.f32.mrb[5].mxu0 }
  0xef   : > { %790 = vst.msk [vmem:[#allocation2 + $0x31] sm:$0xff] %vm333_vm1, %v757_v4  ;;  %v617_v12 = vadd.f32 %v3199_v41, %v616_v9 }
  0xf0   : > { %v760_v16 = vmax.f32 %v622_v8, 0.0 }
  0xf1   : > { %v759_v18 = vmax.f32 %v617_v12, 0.0  ;;  %v2706_v19 = vpop.f32.mrb[6].mxu0  ;;  %v1224_v21 = vld [vmem:[#allocation2 + $0x21] sm:$0xff] }
  0xf2   : > { %v3237_v22 = vld [vmem:[#allocation2 + $0x22] sm:$0xff]  ;;  %793 = vst.msk [vmem:[#allocation2 + $0x51] sm:$0xff] %vm333_vm1, %v760_v16  ;;  %v632_v23 = vadd.f32 %v2706_v19, %v3199_v41  ;;  %v626_v24 = vpop.f32.mrb[7].mxu0  ;;  %v1123_v25 = vld [vmem:[#allocation2 + $0x18] sm:$0xff]  ;;  %v1260_v35 = vmul.f32 %v3233_v15, %v1224_v21  ;;  %v962_v54 = vmul.f32 %v1224_v21, %v3204_v44 }
  0xf3   : > { %v1223_v26 = vld [vmem:[#allocation2 + $0x19] sm:$0xff]  ;;  %792 = vst.msk [vmem:[#allocation2 + $0x49] sm:$0xff] %vm333_vm1, %v759_v18  ;;  %v627_v30 = vadd.f32 %v3199_v41, %v626_v24  ;;  %v1159_v31 = vmul.f32 %v3231_v14, %v1123_v25  ;;  %v1360_v40 = vmul.f32 %v3235_v17, %v3237_v22  ;;  %v861_v48 = vmul.f32 %v1123_v25, %v3202_v43 }
  0xf4   : > { %v1323_v32 = vld [vmem:[#allocation2 + $0x1a] sm:$0xff]  ;;  %v762_v36 = vmax.f32 %v632_v23, 0.0  ;;  %v1259_v37 = vmul.f32 %v3233_v15, %v1223_v26  ;;  %v961_v38 = vmul.f32 %v1223_v26, %v3204_v44 }
  0xf5   : > { %v1124_v34 = vld [vmem:[#allocation2 + $0x20] sm:$0xff]  ;;  %v761_v42 = vmax.f32 %v627_v30, 0.0  ;;  %v2709_v45 = vpop.f32.mrb[8].mxu0  ;;  %v1191_v46 = vadd.f32 %v1159_v31, %v1091_v20  ;;  %v1359_v51 = vmul.f32 %v3235_v17, %v1323_v32  ;;  %v1061_v60 = vmul.f32 %v1323_v32, %v3210_v58 }
  0xf6   : > { %v1160_v39 = vmul.f32 %v3231_v14, %v1124_v34  ;;  %v3256_v47 = vld [vmem:[#allocation2 + $0x39] sm:$0xff]  ;;  %795 = vst.msk [vmem:[#allocation2 + $0x69] sm:$0xff] %vm333_vm1, %v762_v36  ;;  %v642_v49 = vadd.f32 %v2709_v45, %v3199_v41  ;;  %v636_v50 = vpop.f32.mrb[9].mxu0  ;;  %v3263_v52 = vld [vmem:[#allocation2 + $0x30] sm:$0xff]  ;;  %v862_v61 = vmul.f32 %v1124_v34, %v3202_v43  ;;  %v993_v7 = vadd.f32 %v961_v38, %v861_v48 }
  0xf7   : > { %794 = vst.msk [vmem:[#allocation2 + $0x61] sm:$0xff] %vm333_vm1, %v761_v42  ;;  %v637_v55 = vadd.f32 %v3199_v41, %v636_v50  ;;  %v1291_v56 = vadd.f32 %v1259_v37, %v1191_v46  ;;  %v3268_v57 = vld [vmem:[#allocation2 + $0x38] sm:$0xff]  ;;  %v1460_v63 = vmul.f32 %v3249_v33, %v3263_v52  ;;  %v1561_v2 = vmul.f32 %v3241_v27, %v3256_v47  ;;  %v3305_v37 = vld [vmem:[%s4154_s4] ss:$0 sm:$0xff] }
  0xf8   : > { %v1192_v53 = vadd.f32 %v1160_v39, %v1092_v29  ;;  %v3270_v59 = vld [vmem:[#allocation2 + $0x3a] sm:$0xff]  ;;  %v764_v62 = vmax.f32 %v642_v49, 0.0  ;;  %v3276_v0 = vld [vmem:[#allocation2 + $0x31] sm:$0xff]  ;;  %v1161_v8 = vmul.f32 %v3263_v52, %v3231_v14  ;;  %v1461_v12 = vmul.f32 %v3249_v33, %v3268_v57 }
  0xf9   : > { %v763_v3 = vmax.f32 %v637_v55, 0.0  ;;  %v2712_v4 = vpop.f32.mrb[10].mxu0  ;;  %v1391_v5 = vadd.f32 %v1359_v51, %v1291_v56  ;;  %v3280_v6 = vld [vmem:[#allocation2 + $0x32] sm:$0xff]  ;;  %v1661_v13 = vmul.f32 %v3243_v28, %v3270_v59  ;;  %v1560_v19 = vmul.f32 %v3241_v27, %v3276_v0 }
  0xfa   : > { %v1292_v1 = vadd.f32 %v1260_v35, %v1192_v53  ;;  %797 = vst.msk [vmem:[#allocation2 + $0x81] sm:$0xff] %vm333_vm1, %v764_v62  ;;  %v652_v9 = vadd.f32 %v2712_v4, %v3199_v41  ;;  %v646_v10 = vpop.f32.mrb[11].mxu0  ;;  %v1093_v20 = vadd.f32 %v1061_v60, %v993_v7  ;;  %v1660_v23 = vmul.f32 %v3243_v28, %v3280_v6  ;;  %v3298_v32 = vld [vmem:[#allocation2 + $0x48] sm:$0xff] }
  0xfb   : > { %796 = vst.msk [vmem:[#allocation2 + $0x79] sm:$0xff] %vm333_vm1, %v763_v3  ;;  %v647_v16 = vadd.f32 %v3199_v41, %v646_v10  ;;  %v1492_v18 = vadd.f32 %v1460_v63, %v1391_v5  ;;  %v1261_v25 = vmul.f32 %v3276_v0, %v3233_v15  ;;  %v994_v34 = vadd.f32 %v962_v54, %v862_v61  ;;  %v3333_v10 = vld [vmem:[#allocation2 + $0x50] sm:$0xff] }
  0xfc   : > { %v1392_v11 = vadd.f32 %v1360_v40, %v1292_v1  ;;  %v766_v21 = vmax.f32 %v652_v9, 0.0  ;;  %v1193_v31 = vadd.f32 %v1161_v8, %v1093_v20  ;;  %v3307_v40 = vld [vmem:[#allocation2 + $0x49] sm:$0xff]  ;;  %v1062_v42 = vmul.f32 %v3237_v22, %v3210_v58 }
  0xfd   : > { %v765_v26 = vmax.f32 %v647_v16, 0.0  ;;  %v2715_v29 = vpop.f32.mrb[12].mxu0  ;;  %v1592_v30 = vadd.f32 %v1560_v19, %v1492_v18  ;;  %v1162_v45 = vmul.f32 %v3268_v57, %v3231_v14  ;;  %v1361_v49 = vmul.f32 %v3280_v6, %v3235_v17 }
  0xfe   : > { %v1493_v24 = vadd.f32 %v1461_v12, %v1392_v11  ;;  %799 = vst.msk [vmem:[#allocation2 + $0x99] sm:$0xff] %vm333_vm1, %v766_v21  ;;  %v662_v35 = vadd.f32 %v2715_v29, %v3199_v41  ;;  %v656_v36 = vpop.f32.mrb[13].mxu0  ;;  %v1293_v38 = vadd.f32 %v1261_v25, %v1193_v31  ;;  %v1462_v53 = vmul.f32 %v3249_v33, %v3298_v32 }
  0xff   : > { %798 = vst.msk [vmem:[#allocation2 + $0x91] sm:$0xff] %vm333_vm1, %v765_v26  ;;  %v657_v46 = vadd.f32 %v3199_v41, %v656_v36  ;;  %v1692_v48 = vadd.f32 %v1660_v23, %v1592_v30  ;;  %v1094_v54 = vadd.f32 %v1062_v42, %v994_v34  ;;  %v1562_v61 = vmul.f32 %v3241_v27, %v3307_v40  ;;  %v3340_v23 = vld [vmem:[#allocation2 + $0x51] sm:$0xff] }
 0x100   : > { %v1593_v39 = vadd.f32 %v1561_v2, %v1493_v24  ;;  %v768_v50 = vmax.f32 %v662_v35, 0.0  ;;  %v1393_v60 = vadd.f32 %v1361_v49, %v1293_v38  ;;  %v3325_v2 = vld [vmem:[#allocation2 + $0x4a] sm:$0xff]  ;;  %v1262_v4 = vmul.f32 %v3256_v47, %v3233_v15  ;;  %v3342_v24 = vld [vmem:[#allocation2 + $0x52] sm:$0xff] }
 0x101   : > { %v767_v55 = vmax.f32 %v657_v46, 0.0  ;;  %v2718_v22 = vpop.f32.mrb[14].mxu0  ;;  %v1731_v56 = vadd.f32 %v3305_v37, %v1692_v48  ;;  %v1194_v3 = vadd.f32 %v1162_v45, %v1094_v54  ;;  %v1362_v9 = vmul.f32 %v3270_v59, %v3235_v17 }
 0x102   : > { %v1693_v51 = vadd.f32 %v1661_v13, %v1593_v39  ;;  %801 = vst.msk [vmem:[#allocation2 + $0xb1] sm:$0xff] %vm333_vm1, %v768_v50  ;;  %v672_v62 = vadd.f32 %v2718_v22, %v3199_v41  ;;  %v666_v63 = vpop.f32.mrb[15].mxu0  ;;  %v1494_v8 = vadd.f32 %v1462_v53, %v1393_v60  ;;  %v863_v16 = vmul.f32 %v3263_v52, %v3202_v43 }
 0x103   : > { %800 = vst.msk [vmem:[#allocation2 + $0xa9] sm:$0xff] %vm333_vm1, %v767_v55  ;;  %v667_v5 = vadd.f32 %v3199_v41, %v666_v63  ;;  %v1763_v7 = vmax.f32 %v1731_v56, 0.0  ;;  %v1294_v13 = vadd.f32 %v1262_v4, %v1194_v3  ;;  %v1662_v21 = vmul.f32 %v3243_v28, %v3325_v2  ;;  %v3374_v3 = vld [vmem:[#allocation2 + $0x60] sm:$0xff] }
 0x104   : > { %v1732_v1 = vadd.f32 %v3305_v37, %v1693_v51  ;;  %v770_v11 = vmax.f32 %v672_v62, 0.0  ;;  %v1594_v20 = vadd.f32 %v1562_v61, %v1494_v8  ;;  %v963_v25 = vmul.f32 %v3276_v0, %v3204_v44 }
 0x105   : > { %v769_v18 = vmax.f32 %v667_v5, 0.0  ;;  %v2721_v19 = vpop.f32.mrb[16].mxu0  ;;  %2745 = vmatprep.mubr.msk.f32.mxu0 %vm333_vm1, %v1763_v7  ;;  %v1394_v29 = vadd.f32 %v1362_v9, %v1294_v13  ;;  %v1463_v30 = vmul.f32 %v3249_v33, %v3333_v10  ;;  %v1063_v31 = vmul.f32 %v3280_v6, %v3210_v58 }
 0x106   : > { %v1764_v12 = vmax.f32 %v1732_v1, 0.0  ;;  %803 = vst.msk [vmem:[#allocation2 + $0xc9] sm:$0xff] %vm333_vm1, %v770_v11  ;;  %v682_v26 = vadd.f32 %v2721_v19, %v3199_v41  ;;  %v676_v52 = vpop.f32.mrb[17].mxu0  ;;  %v1694_v35 = vadd.f32 %v1662_v21, %v1594_v20  ;;  %v995_v0 = vadd.f32 %v963_v25, %v863_v16  ;;  %v3384_v11 = vld [vmem:[#allocation2 + $0x61] sm:$0xff] }
 0x107   : > { %802 = vst.msk [vmem:[#allocation2 + $0xc1] sm:$0xff] %vm333_vm1, %v769_v18  ;;  %v677_v34 = vadd.f32 %v3199_v41, %v676_v52  ;;  %v1163_v36 = vmul.f32 %v3298_v32, %v3231_v14  ;;  %v1495_v42 = vadd.f32 %v1463_v30, %v1394_v29  ;;  %v1563_v45 = vmul.f32 %v3241_v27, %v3340_v23  ;;  %v3389_v19 = vld [vmem:[#allocation2 + $0x62] sm:$0xff] }
 0x108   : > { %2746 = vmatmul.mubr.msk.f32.vlgmr.msra.gmra.mrb[32].mxu0 %vm333_vm1, %v1764_v12  ;;  %v772_v39 = vmax.f32 %v682_v26, 0.0  ;;  %v1663_v46 = vmul.f32 %v3243_v28, %v3342_v24  ;;  %v1733_v6 = vadd.f32 %v3305_v37, %v1694_v35  ;;  %v1095_v49 = vadd.f32 %v1063_v31, %v995_v0  ;;  %v3398_v35 = vld [vmem:[#allocation2 + $0x68] sm:$0xff] }
 0x109   : > { %v771_v48 = vmax.f32 %v677_v34, 0.0  ;;  %v2724_v38 = vpop.f32.mrb[18].mxu0  ;;  %v1263_v50 = vmul.f32 %v3307_v40, %v3233_v15  ;;  %v1595_v54 = vadd.f32 %v1563_v45, %v1495_v42  ;;  %v864_v55 = vmul.f32 %v3268_v57, %v3202_v43  ;;  %v3400_v0 = vld [vmem:[#allocation2 + $0x69] sm:$0xff] }
 0x10a   : > { %805 = vst.msk [vmem:[#allocation2 + $0xe1] sm:$0xff] %vm333_vm1, %v772_v39  ;;  %v692_v51 = vadd.f32 %v2724_v38, %v3199_v41  ;;  %v686_v53 = vpop.f32.mrb[19].mxu0  ;;  %v964_v22 = vmul.f32 %v3256_v47, %v3204_v44  ;;  %v1765_v56 = vmax.f32 %v1733_v6, 0.0  ;;  %v1195_v61 = vadd.f32 %v1163_v36, %v1095_v49  ;;  %v3412_v6 = vld [vmem:[#allocation2 + $0x6a] sm:$0xff] }
 0x10b   : > { %804 = vst.msk [vmem:[#allocation2 + $0xd9] sm:$0xff] %vm333_vm1, %v771_v48  ;;  %v687_v60 = vadd.f32 %v3199_v41, %v686_v53  ;;  %v1064_v62 = vmul.f32 %v3270_v59, %v3210_v58  ;;  %v1695_v1 = vadd.f32 %v1663_v46, %v1595_v54  ;;  %v1164_v57 = vmul.f32 %v3333_v10, %v3231_v14 }
 0x10c   : > { %v774_v63 = vmax.f32 %v692_v51, 0.0  ;;  %v996_v4 = vadd.f32 %v964_v22, %v864_v55  ;;  %2748 = vmatprep.mubr.msk.f32.mxu0 %vm333_vm1, %v1765_v56  ;;  %v1295_v7 = vadd.f32 %v1263_v50, %v1195_v61  ;;  %v1363_v8 = vmul.f32 %v3325_v2, %v3235_v17 }
 0x10d   : > { %v773_v47 = vmax.f32 %v687_v60, 0.0  ;;  %v2727_v5 = vpop.f32.mrb[20].mxu0  ;;  %v1734_v59 = vadd.f32 %v3305_v37, %v1695_v1  ;;  %v1464_v18 = vmul.f32 %v3249_v33, %v3374_v3  ;;  %v1264_v21 = vmul.f32 %v3340_v23, %v3233_v15 }
 0x10e   : > { %807 = vst.msk [vmem:[#allocation2 + $0xf9] sm:$0xff] %vm333_vm1, %v774_v63  ;;  %v702_v9 = vadd.f32 %v2727_v5, %v3199_v41  ;;  %v696_v12 = vpop.f32.mrb[21].mxu0  ;;  %v1096_v13 = vadd.f32 %v1064_v62, %v996_v4  ;;  %v1395_v16 = vadd.f32 %v1363_v8, %v1295_v7  ;;  %v865_v29 = vmul.f32 %v3298_v32, %v3202_v43  ;;  %v3430_v4 = vld [vmem:[#allocation2 + $0x78] sm:$0xff] }
 0x10f   : > { %806 = vst.msk [vmem:[#allocation2 + $0xf1] sm:$0xff] %vm333_vm1, %v773_v47  ;;  %v697_v20 = vadd.f32 %v3199_v41, %v696_v12  ;;  %v1766_v25 = vmax.f32 %v1734_v59, 0.0  ;;  %v1564_v31 = vmul.f32 %v3241_v27, %v3384_v11  ;;  %v965_v39 = vmul.f32 %v3307_v40, %v3204_v44  ;;  %v3439_v12 = vld [vmem:[#allocation2 + $0x7a] sm:$0xff] }
 0x110   : > { %v776_v26 = vmax.f32 %v702_v9, 0.0  ;;  %v1196_v52 = vadd.f32 %v1164_v57, %v1096_v13  ;;  %v1496_v30 = vadd.f32 %v1464_v18, %v1395_v16  ;;  %v1664_v32 = vmul.f32 %v3243_v28, %v3389_v19  ;;  %v3432_v57 = vld [vmem:[#allocation2 + $0x79] sm:$0xff] }
 0x111   : > { %v775_v34 = vmax.f32 %v697_v20, 0.0  ;;  %v2730_v36 = vpop.f32.mrb[22].mxu0  ;;  %2749 = vmatmul.mubr.msk.f32.gmra.mrb[34].mxu0 %vm333_vm1, %v1766_v25  ;;  %v1364_v45 = vmul.f32 %v3342_v24, %v3235_v17  ;;  %v997_v40 = vadd.f32 %v965_v39, %v865_v29  ;;  %v1065_v49 = vmul.f32 %v3325_v2, %v3210_v58 }
 0x112   : > { %809 = vst.msk [vmem:[#allocation2 + $0x111] sm:$0xff] %vm333_vm1, %v776_v26  ;;  %v1296_v42 = vadd.f32 %v1264_v21, %v1196_v52  ;;  %v712_v46 = vadd.f32 %v2730_v36, %v3199_v41  ;;  %v706_v48 = vpop.f32.mrb[23].mxu0  ;;  %v1596_v38 = vadd.f32 %v1564_v31, %v1496_v30  ;;  %v1165_v50 = vmul.f32 %v3374_v3, %v3231_v14 }
 0x113   : > { %808 = vst.msk [vmem:[#allocation2 + $0x109] sm:$0xff] %vm333_vm1, %v775_v34  ;;  %v1465_v53 = vmul.f32 %v3249_v33, %v3398_v35  ;;  %v1565_v54 = vmul.f32 %v3241_v27, %v3400_v0  ;;  %v1097_v56 = vadd.f32 %v1065_v49, %v997_v40  ;;  %v707_v60 = vadd.f32 %v3199_v41, %v706_v48  ;;  %v3469_v49 = vld [vmem:[#allocation2 + $0x82] sm:$0xff] }
 0x114   : > { %v1396_v51 = vadd.f32 %v1364_v45, %v1296_v42  ;;  %v778_v55 = vmax.f32 %v712_v46, 0.0  ;;  %v1696_v22 = vadd.f32 %v1664_v32, %v1596_v38  ;;  %v866_v61 = vmul.f32 %v3333_v10, %v3202_v43  ;;  %v3460_v32 = vld [vmem:[#allocation2 + $0x80] sm:$0xff] }
 0x115   : > { %v2733_v62 = vpop.f32.mrb[24].mxu0  ;;  %v1665_v63 = vmul.f32 %v3243_v28, %v3412_v6  ;;  %v1265_v1 = vmul.f32 %v3384_v11, %v3233_v15  ;;  %v966_v47 = vmul.f32 %v3340_v23, %v3204_v44  ;;  %v1197_v7 = vadd.f32 %v1165_v50, %v1097_v56  ;;  %v3462_v42 = vld [vmem:[#allocation2 + $0x81] sm:$0xff] }
 0x116   : > { %v1497_v2 = vadd.f32 %v1465_v53, %v1396_v51  ;;  %811 = vst.msk [vmem:[#allocation2 + $0x129] sm:$0xff] %vm333_vm1, %v778_v55  ;;  %v716_v5 = vpop.f32.mrb[25].mxu0  ;;  %v1735_v10 = vadd.f32 %v3305_v37, %v1696_v22  ;;  %v1365_v8 = vmul.f32 %v3389_v19, %v3235_v17  ;;  %v777_v59 = vmax.f32 %v707_v60, 0.0 }
 0x117   : > { %v998_v13 = vadd.f32 %v966_v47, %v866_v61  ;;  %v1066_v16 = vmul.f32 %v3342_v24, %v3210_v58  ;;  %v1166_v18 = vmul.f32 %v3398_v35, %v3231_v14  ;;  %v1297_v23 = vadd.f32 %v1265_v1, %v1197_v7  ;;  %v3494_v7 = vld [vmem:[#allocation2 + $0x91] sm:$0xff] }
 0x118   : > { %v1597_v9 = vadd.f32 %v1565_v54, %v1497_v2  ;;  %v1767_v20 = vmax.f32 %v1735_v10, 0.0  ;;  %v1466_v21 = vmul.f32 %v3249_v33, %v3430_v4  ;;  %v1566_v25 = vmul.f32 %v3241_v27, %v3432_v57  ;;  %810 = vst.msk [vmem:[#allocation2 + $0x121] sm:$0xff] %vm333_vm1, %v777_v59  ;;  %v3492_v10 = vld [vmem:[#allocation2 + $0x90] sm:$0xff] }
 0x119   : > { %v2736_v26 = vpop.f32.mrb[26].mxu0  ;;  %v1098_v29 = vadd.f32 %v1066_v16, %v998_v13  ;;  %v722_v30 = vadd.f32 %v2733_v62, %v3199_v41  ;;  %v867_v24 = vmul.f32 %v3374_v3, %v3202_v43  ;;  %v1397_v34 = vadd.f32 %v1365_v8, %v1297_v23 }
 0x11a   : > { %v1697_v52 = vadd.f32 %v1665_v63, %v1597_v9  ;;  %v3453_v31 = vpop.f32.mrb[27].mxu0  ;;  %2751 = vmatprep.mubr.msk.f32.mxu0 %vm333_vm1, %v1767_v20  ;;  %v1666_v36 = vmul.f32 %v3243_v28, %v3439_v12  ;;  %v1266_v39 = vmul.f32 %v3400_v0, %v3233_v15  ;;  %v967_v45 = vmul.f32 %v3384_v11, %v3204_v44 }
 0x11b   : > { %v1198_v46 = vadd.f32 %v1166_v18, %v1098_v29  ;;  %v1366_v48 = vmul.f32 %v3412_v6, %v3235_v17  ;;  %v780_v38 = vmax.f32 %v722_v30, 0.0  ;;  %v1498_v40 = vadd.f32 %v1466_v21, %v1397_v34  ;;  %v3502_v18 = vld [vmem:[#allocation2 + $0x92] sm:$0xff] }
 0x11c   : > { %v1736_v3 = vadd.f32 %v3305_v37, %v1697_v52  ;;  %v999_v50 = vadd.f32 %v967_v45, %v867_v24  ;;  %v1067_v51 = vmul.f32 %v3389_v19, %v3210_v58  ;;  %v1167_v53 = vmul.f32 %v3430_v4, %v3231_v14 }
 0x11d   : > { %v3475_v54 = vpop.f32.mrb[28].mxu0  ;;  %v1298_v55 = vadd.f32 %v1266_v39, %v1198_v46  ;;  %v1467_v22 = vmul.f32 %v3249_v33, %v3460_v32  ;;  %v1567_v56 = vmul.f32 %v3241_v27, %v3462_v42  ;;  %813 = vst.msk [vmem:[#allocation2 + $0x141] sm:$0xff] %vm333_vm1, %v780_v38  ;;  %v1598_v61 = vadd.f32 %v1566_v25, %v1498_v40  ;;  %v3521_v46 = vld [vmem:[#allocation2 + $0x98] sm:$0xff] }
 0x11e   : > { %v1768_v11 = vmax.f32 %v1736_v3, 0.0  ;;  %v3482_v60 = vpop.f32.mrb[29].mxu0  ;;  %v1099_v62 = vadd.f32 %v1067_v51, %v999_v50  ;;  %v717_v19 = vadd.f32 %v3199_v41, %v716_v5  ;;  %v868_v2 = vmul.f32 %v3398_v35, %v3202_v43  ;;  %v3527_v51 = vld [vmem:[#allocation2 + $0x99] sm:$0xff] }
 0x11f   : > { %v1398_v63 = vadd.f32 %v1366_v48, %v1298_v55  ;;  %v1667_v1 = vmul.f32 %v3243_v28, %v3469_v49  ;;  %v1267_v47 = vmul.f32 %v3432_v57, %v3233_v15  ;;  %v968_v8 = vmul.f32 %v3400_v0, %v3204_v44 }
 0x120   : > { %2752 = vmatmul.mubr.msk.f32.gmra.mrb[36].mxu0 %vm333_vm1, %v1768_v11  ;;  %v1698_v5 = vadd.f32 %v1666_v36, %v1598_v61  ;;  %v1199_v59 = vadd.f32 %v1167_v53, %v1099_v62  ;;  %v1367_v35 = vmul.f32 %v3439_v12, %v3235_v17  ;;  %v779_v9 = vmax.f32 %v717_v19, 0.0 }
 0x121   : > { %v3500_v13 = vpop.f32.mrb[30].mxu0  ;;  %v1499_v16 = vadd.f32 %v1467_v22, %v1398_v63  ;;  %v1000_v20 = vadd.f32 %v968_v8, %v868_v2  ;;  %v1068_v23 = vmul.f32 %v3412_v6, %v3210_v58  ;;  %v1168_v21 = vmul.f32 %v3460_v32, %v3231_v14 }
 0x122   : > { %v3508_v25 = vpop.f32.mrb[31].mxu0  ;;  %v1737_v0 = vadd.f32 %v3305_v37, %v1698_v5  ;;  %v1299_v52 = vadd.f32 %v1267_v47, %v1199_v59  ;;  %v1468_v29 = vmul.f32 %v3249_v33, %v3492_v10  ;;  %v1568_v30 = vmul.f32 %v3241_v27, %v3494_v7  ;;  %812 = vst.msk [vmem:[#allocation2 + $0x139] sm:$0xff] %vm333_vm1, %v779_v9  ;;  %v3544_v47 = vld [vmem:[#allocation2 + $0x9a] sm:$0xff] }
 0x123   : > { %v1599_v24 = vadd.f32 %v1567_v56, %v1499_v16  ;;  %v1100_v34 = vadd.f32 %v1068_v23, %v1000_v20  ;;  %v732_v6 = vadd.f32 %v2736_v26, %v3199_v41  ;;  %v869_v36 = vmul.f32 %v3430_v4, %v3202_v43  ;;  %v3552_v16 = vld [vmem:[#allocation2 + $0xa8] sm:$0xff] }
 0x124   : > { %v1769_v39 = vmax.f32 %v1737_v0, 0.0  ;;  %v1399_v45 = vadd.f32 %v1367_v35, %v1299_v52  ;;  %v1668_v3 = vmul.f32 %v3243_v28, %v3502_v18  ;;  %v969_v48 = vmul.f32 %v3432_v57, %v3204_v44  ;;  %v3554_v20 = vld [vmem:[#allocation2 + $0xa9] sm:$0xff] }
 0x125   : > { %v1699_v38 = vadd.f32 %v1667_v1, %v1599_v24  ;;  %v1200_v40 = vadd.f32 %v1168_v21, %v1100_v34  ;;  %v1268_v50 = vmul.f32 %v3462_v42, %v3233_v15  ;;  %v782_v26 = vmax.f32 %v732_v6, 0.0 }
 0x126   : > { %2754 = vmatprep.mubr.msk.f32.mxu0 %vm333_vm1, %v1769_v39  ;;  %v1500_v4 = vadd.f32 %v1468_v29, %v1399_v45  ;;  %v1001_v53 = vadd.f32 %v969_v48, %v869_v36  ;;  %v1069_v11 = vmul.f32 %v3439_v12, %v3210_v58  ;;  %v1169_v55 = vmul.f32 %v3492_v10, %v3231_v14 }
 0x127   : > { %v1738_v57 = vadd.f32 %v3305_v37, %v1699_v38  ;;  %v1300_v22 = vadd.f32 %v1268_v50, %v1200_v40  ;;  %v1368_v56 = vmul.f32 %v3469_v49, %v3235_v17  ;;  %v1469_v61 = vmul.f32 %v3249_v33, %v3521_v46  ;;  %815 = vst.msk [vmem:[#allocation2 + $0x159] sm:$0xff] %vm333_vm1, %v782_v26  ;;  %v1634_v38 = vld [vmem:[#allocation2 + $0xaa] sm:$0xff] }
 0x128   : > { %v1600_v62 = vadd.f32 %v1568_v30, %v1500_v4  ;;  %v1569_v19 = vmul.f32 %v3241_v27, %v3527_v51  ;;  %v1101_v2 = vadd.f32 %v1069_v11, %v1001_v53  ;;  %v727_v12 = vadd.f32 %v3199_v41, %v3453_v31  ;;  %v3577_v26 = vld [vmem:[#allocation2 + $0xb0] sm:$0xff] }
 0x129   : > { %v1770_v63 = vmax.f32 %v1738_v57, 0.0  ;;  %v1400_v1 = vadd.f32 %v1368_v56, %v1300_v22  ;;  %v870_v8 = vmul.f32 %v3460_v32, %v3202_v43  ;;  %v970_v5 = vmul.f32 %v3462_v42, %v3204_v44  ;;  %v3579_v4 = vld [vmem:[#allocation2 + $0xb1] sm:$0xff] }
 0x12a   : > { %v1700_v59 = vadd.f32 %v1668_v3, %v1600_v62  ;;  %v1201_v35 = vadd.f32 %v1169_v55, %v1101_v2  ;;  %v1269_v9 = vmul.f32 %v3494_v7, %v3233_v15  ;;  %v781_v31 = vmax.f32 %v727_v12, 0.0  ;;  %v3589_v56 = vld [vmem:[#allocation2 + $0xb2] sm:$0xff] }
 0x12b   : > { %2755 = vmatmul.mubr.msk.f32.gmra.mrb[38].mxu0 %vm333_vm1, %v1770_v63  ;;  %v1501_v23 = vadd.f32 %v1469_v61, %v1400_v1  ;;  %v1002_v21 = vadd.f32 %v970_v5, %v870_v8  ;;  %v1070_v32 = vmul.f32 %v3469_v49, %v3210_v58  ;;  %v1170_v42 = vmul.f32 %v3521_v46, %v3231_v14 }
 0x12c   : > { %v1739_v0 = vadd.f32 %v3305_v37, %v1700_v59  ;;  %v1669_v52 = vmul.f32 %v3243_v28, %v3544_v47  ;;  %v1301_v29 = vadd.f32 %v1269_v9, %v1201_v35  ;;  %v1369_v30 = vmul.f32 %v3502_v18, %v3235_v17  ;;  %814 = vst.msk [vmem:[#allocation2 + $0x151] sm:$0xff] %vm333_vm1, %v781_v31  ;;  %v3603_v35 = vld [vmem:[#allocation2 + $0xc0] sm:$0xff] }
 0x12d   : > { %v1601_v24 = vadd.f32 %v1569_v19, %v1501_v23  ;;  %v1470_v34 = vmul.f32 %v3249_v33, %v3552_v16  ;;  %v1570_v49 = vmul.f32 %v3241_v27, %v3554_v20  ;;  %v1102_v6 = vadd.f32 %v1070_v32, %v1002_v21 }
 0x12e   : > { %v1771_v36 = vmax.f32 %v1739_v0, 0.0  ;;  %v1401_v39 = vadd.f32 %v1369_v30, %v1301_v29  ;;  %v742_v45 = vadd.f32 %v3475_v54, %v3199_v41  ;;  %v871_v3 = vmul.f32 %v3492_v10, %v3202_v43 }
 0x12f   : > { %v1701_v48 = vadd.f32 %v1669_v52, %v1601_v24  ;;  %v1202_v40 = vadd.f32 %v1170_v42, %v1102_v6  ;;  %v1270_v50 = vmul.f32 %v3527_v51, %v3233_v15  ;;  %v971_v53 = vmul.f32 %v3494_v7, %v3204_v44 }
 0x130   : > { %2757 = vmatprep.mubr.msk.f32.mxu0 %vm333_vm1, %v1771_v36  ;;  %v1502_v11 = vadd.f32 %v1470_v34, %v1401_v39  ;;  %v1370_v54 = vmul.f32 %v3544_v47, %v3235_v17  ;;  %v784_v10 = vmax.f32 %v742_v45, 0.0  ;;  %v1071_v55 = vmul.f32 %v3502_v18, %v3210_v58 }
 0x131   : > { %v1740_v57 = vadd.f32 %v3305_v37, %v1701_v48  ;;  %v1302_v22 = vadd.f32 %v1270_v50, %v1202_v40  ;;  %v1003_v61 = vadd.f32 %v971_v53, %v871_v3  ;;  %v1171_v62 = vmul.f32 %v3552_v16, %v3231_v14  ;;  %v1636_v3 = vld [vmem:[#allocation2 + $0xc2] sm:$0xff] }
 0x132   : > { %v1602_v7 = vadd.f32 %v1570_v49, %v1502_v11  ;;  %v1670_v19 = vmul.f32 %v3243_v28, %v1634_v38  ;;  %v1471_v2 = vmul.f32 %v3249_v33, %v3577_v26  ;;  %v1571_v12 = vmul.f32 %v3241_v27, %v3579_v4  ;;  %817 = vst.msk [vmem:[#allocation2 + $0x171] sm:$0xff] %vm333_vm1, %v784_v10  ;;  %v3627_v48 = vld [vmem:[#allocation2 + $0xc8] sm:$0xff] }
 0x133   : > { %v1772_v18 = vmax.f32 %v1740_v57, 0.0  ;;  %v1402_v63 = vadd.f32 %v1370_v54, %v1302_v22  ;;  %v1103_v1 = vadd.f32 %v1071_v55, %v1003_v61  ;;  %v737_v8 = vadd.f32 %v3199_v41, %v3482_v60  ;;  %v3612_v60 = vld [vmem:[#allocation2 + $0xc1] sm:$0xff]  ;;  %v3636_v54 = vld [vmem:[#allocation2 + $0xc9] sm:$0xff] }
 0x134   : > { %v1702_v5 = vadd.f32 %v1670_v19, %v1602_v7  ;;  %v1671_v59 = vmul.f32 %v3243_v28, %v3589_v56  ;;  %v872_v9 = vmul.f32 %v3521_v46, %v3202_v43  ;;  %v972_v31 = vmul.f32 %v3527_v51, %v3204_v44 }
 0x135   : > { %2758 = vmatmul.mubr.msk.f32.gmra.mrb[40].mxu0 %vm333_vm1, %v1772_v18  ;;  %v1503_v23 = vadd.f32 %v1471_v2, %v1402_v63  ;;  %v1203_v21 = vadd.f32 %v1171_v62, %v1103_v1  ;;  %v1271_v32 = vmul.f32 %v3554_v20, %v3233_v15  ;;  %v783_v42 = vmax.f32 %v737_v8, 0.0 }
 0x136   : > { %v1741_v0 = vadd.f32 %v3305_v37, %v1702_v5  ;;  %v1004_v52 = vadd.f32 %v972_v31, %v872_v9  ;;  %v1072_v29 = vmul.f32 %v3544_v47, %v3210_v58  ;;  %v1172_v46 = vmul.f32 %v3577_v26, %v3231_v14 }
 0x137   : > { %v1603_v51 = vadd.f32 %v1571_v12, %v1503_v23  ;;  %v1303_v30 = vadd.f32 %v1271_v32, %v1203_v21  ;;  %v1371_v24 = vmul.f32 %v1634_v38, %v3235_v17  ;;  %v1472_v34 = vmul.f32 %v3249_v33, %v3603_v35  ;;  %816 = vst.msk [vmem:[#allocation2 + $0x169] sm:$0xff] %vm333_vm1, %v783_v42  ;;  %v1438_v23 = vld [vmem:[#allocation2 + $0xd8] sm:$0xff] }
 0x138   : > { %v1773_v49 = vmax.f32 %v1741_v0, 0.0  ;;  %v1572_v6 = vmul.f32 %v3241_v27, %v3612_v60  ;;  %v1104_v36 = vadd.f32 %v1072_v29, %v1004_v52  ;;  %v752_v47 = vadd.f32 %v3500_v13, %v3199_v41  ;;  %v1538_v52 = vld [vmem:[#allocation2 + $0xd9] sm:$0xff] }
 0x139   : > { %v1703_v39 = vadd.f32 %v1671_v59, %v1603_v51  ;;  %v1403_v45 = vadd.f32 %v1371_v24, %v1303_v30  ;;  %v873_v40 = vmul.f32 %v3552_v16, %v3202_v43  ;;  %v973_v50 = vmul.f32 %v3554_v20, %v3204_v44  ;;  %v1637_v59 = vld [vmem:[#allocation2 + $0xca] sm:$0xff] }
 0x13a   : > { %2760 = vmatprep.mubr.msk.f32.mxu0 %vm333_vm1, %v1773_v49  ;;  %v1204_v53 = vadd.f32 %v1172_v46, %v1104_v36  ;;  %v1272_v11 = vmul.f32 %v3579_v4, %v3233_v15  ;;  %v786_v13 = vmax.f32 %v752_v47, 0.0  ;;  %v1073_v10 = vmul.f32 %v1634_v38, %v3210_v58 }
 0x13b   : > { %v1742_v55 = vadd.f32 %v3305_v37, %v1703_v39  ;;  %v1504_v57 = vadd.f32 %v1472_v34, %v1403_v45  ;;  %v1005_v22 = vadd.f32 %v973_v50, %v873_v40  ;;  %v1173_v16 = vmul.f32 %v3603_v35, %v3231_v14  ;;  %v1638_v34 = vld [vmem:[#allocation2 + $0xda] sm:$0xff] }
 0x13c   : > { %v1672_v20 = vmul.f32 %v3243_v28, %v1636_v3  ;;  %v1304_v61 = vadd.f32 %v1272_v11, %v1204_v53  ;;  %v1372_v62 = vmul.f32 %v3589_v56, %v3235_v17  ;;  %v1473_v7 = vmul.f32 %v3249_v33, %v3627_v48  ;;  %819 = vst.msk [vmem:[#allocation2 + $0x189] sm:$0xff] %vm333_vm1, %v786_v13  ;;  %v1439_v40 = vld [vmem:[#allocation2 + $0xe0] sm:$0xff] }
 0x13d   : > { %v1774_v19 = vmax.f32 %v1742_v55, 0.0  ;;  %v1604_v38 = vadd.f32 %v1572_v6, %v1504_v57  ;;  %v1573_v2 = vmul.f32 %v3241_v27, %v3636_v54  ;;  %v1105_v12 = vadd.f32 %v1073_v10, %v1005_v22  ;;  %v1539_v53 = vld [vmem:[#allocation2 + $0xe1] sm:$0xff] }
 0x13e   : > { %v1404_v18 = vadd.f32 %v1372_v62, %v1304_v61  ;;  %v747_v63 = vadd.f32 %v3199_v41, %v3508_v25  ;;  %v874_v1 = vmul.f32 %v3577_v26, %v3202_v43  ;;  %v974_v8 = vmul.f32 %v3579_v4, %v3204_v44  ;;  %v1639_v22 = vld [vmem:[#allocation2 + $0xe2] sm:$0xff] }
 0x13f   : > { %2761 = vmatmul.mubr.msk.f32.gmra.mrb[42].mxu0 %vm333_vm1, %v1774_v19  ;;  %v1704_v5 = vadd.f32 %v1672_v20, %v1604_v38  ;;  %v1205_v9 = vadd.f32 %v1173_v16, %v1105_v12  ;;  %v1273_v31 = vmul.f32 %v3612_v60, %v3233_v15  ;;  %v1074_v21 = vmul.f32 %v3589_v56, %v3210_v58  ;;  %v3685_v38 = vld [vmem:[#allocation2 + $0xf0] sm:$0xff] }
 0x140   : > { %v1505_v32 = vadd.f32 %v1473_v7, %v1404_v18  ;;  %v785_v41 = vmax.f32 %v747_v63, 0.0  ;;  %v1006_v25 = vadd.f32 %v974_v8, %v874_v1  ;;  %v1174_v26 = vmul.f32 %v3627_v48, %v3231_v14 }
 0x141   : > { %v1743_v4 = vadd.f32 %v3305_v37, %v1704_v5  ;;  %v1305_v42 = vadd.f32 %v1273_v31, %v1205_v9  ;;  %v1373_v0 = vmul.f32 %v1636_v3, %v3235_v17  ;;  %v1673_v46 = vmul.f32 %v3243_v28, %v1637_v59 }
 0x142   : > { %v1605_v29 = vadd.f32 %v1573_v2, %v1505_v32  ;;  %v1474_v51 = vmul.f32 %v3249_v33, %v1438_v23  ;;  %818 = vst.msk [vmem:[#allocation2 + $0x181] sm:$0xff] %vm333_vm1, %v785_v41  ;;  %v1106_v56 = vadd.f32 %v1074_v21, %v1006_v25  ;;  %v875_v49 = vmul.f32 %v3603_v35, %v3202_v43  ;;  %v1540_v25 = vld [vmem:[#allocation2 + $0xf1] sm:$0xff] }
 0x143   : > { %v1775_v30 = vmax.f32 %v1743_v4, 0.0  ;;  %v1405_v24 = vadd.f32 %v1373_v0, %v1305_v42  ;;  %v975_v6 = vmul.f32 %v3612_v60, %v3204_v44  ;;  %v1574_v47 = vmul.f32 %v3241_v27, %v1538_v52 }
 0x144   : > { %v1705_v36 = vadd.f32 %v1673_v46, %v1605_v29  ;;  %v1206_v39 = vadd.f32 %v1174_v26, %v1106_v56  ;;  %v1274_v45 = vmul.f32 %v3636_v54, %v3233_v15  ;;  %v1075_v13 = vmul.f32 %v1636_v3, %v3210_v58  ;;  %v1640_v26 = vld [vmem:[#allocation2 + $0xf2] sm:$0xff] }
 0x145   : > { %2763 = vmatprep.mubr.msk.f32.mxu0 %vm333_vm1, %v1775_v30  ;;  %v1506_v50 = vadd.f32 %v1474_v51, %v1405_v24  ;;  %v1007_v11 = vadd.f32 %v975_v6, %v875_v49  ;;  %v1175_v35 = vmul.f32 %v1438_v23, %v3231_v14  ;;  %v1674_v60 = vmul.f32 %v3243_v28, %v1638_v34  ;;  %v3701_v51 = vld [vmem:[#allocation2 + $0xf8] sm:$0xff] }
 0x146   : > { %v1744_v10 = vadd.f32 %v3305_v37, %v1705_v36  ;;  %v1306_v55 = vadd.f32 %v1274_v45, %v1206_v39  ;;  %v1374_v57 = vmul.f32 %v1637_v59, %v3235_v17  ;;  %v1475_v20 = vmul.f32 %v3249_v33, %v1439_v40  ;;  %v3704_v49 = vld [vmem:[#allocation2 + $0xf9] sm:$0xff] }
 0x147   : > { %v1606_v16 = vadd.f32 %v1574_v47, %v1506_v50  ;;  %v1107_v61 = vadd.f32 %v1075_v13, %v1007_v11  ;;  %v876_v62 = vmul.f32 %v3627_v48, %v3202_v43  ;;  %v1575_v3 = vmul.f32 %v3241_v27, %v1539_v53 }
 0x148   : > { %v1776_v7 = vmax.f32 %v1744_v10, 0.0  ;;  %v1406_v19 = vadd.f32 %v1374_v57, %v1306_v55  ;;  %v976_v2 = vmul.f32 %v3636_v54, %v3204_v44  ;;  %v1675_v18 = vmul.f32 %v3243_v28, %v1639_v22  ;;  %v1641_v10 = vld [vmem:[#allocation2 + $0xfa] sm:$0xff] }
 0x149   : > { %v1706_v12 = vadd.f32 %v1674_v60, %v1606_v16  ;;  %v1207_v63 = vadd.f32 %v1175_v35, %v1107_v61  ;;  %v1275_v1 = vmul.f32 %v1538_v52, %v3233_v15  ;;  %v1076_v48 = vmul.f32 %v1637_v59, %v3210_v58 }
 0x14a   : > { %2764 = vmatmul.mubr.msk.f32.gmra.mrb[44].mxu0 %vm333_vm1, %v1776_v7  ;;  %v1507_v8 = vadd.f32 %v1475_v20, %v1406_v19  ;;  %v1008_v5 = vadd.f32 %v976_v2, %v876_v62  ;;  %v1176_v9 = vmul.f32 %v1439_v40, %v3231_v14  ;;  %v1375_v32 = vmul.f32 %v1638_v34, %v3235_v17  ;;  %v3720_v62 = vld [vmem:[#allocation2 + $0x108] sm:$0xff] }
 0x14b   : > { %v1745_v31 = vadd.f32 %v3305_v37, %v1706_v12  ;;  %v1307_v21 = vadd.f32 %v1275_v1, %v1207_v63  ;;  %v1476_v54 = vmul.f32 %v3249_v33, %v3685_v38  ;;  %v877_v42 = vmul.f32 %v1438_v23, %v3202_v43  ;;  %v3722_v19 = vld [vmem:[#allocation2 + $0x109] sm:$0xff] }
 0x14c   : > { %v1607_v41 = vadd.f32 %v1575_v3, %v1507_v8  ;;  %v1108_v4 = vadd.f32 %v1076_v48, %v1008_v5  ;;  %v977_v0 = vmul.f32 %v1538_v52, %v3204_v44  ;;  %v1276_v46 = vmul.f32 %v1539_v53, %v3233_v15 }
 0x14d   : > { %v1777_v29 = vmax.f32 %v1745_v31, 0.0  ;;  %v1407_v59 = vadd.f32 %v1375_v32, %v1307_v21  ;;  %v1077_v56 = vmul.f32 %v1638_v34, %v3210_v58  ;;  %v1177_v36 = vmul.f32 %v3685_v38, %v3231_v14  ;;  %v1642_v21 = vld [vmem:[#allocation2 + $0x10a] sm:$0xff] }
 0x14e   : > { %v1707_v30 = vadd.f32 %v1675_v18, %v1607_v41  ;;  %v1208_v24 = vadd.f32 %v1176_v9, %v1108_v4  ;;  %v1009_v6 = vadd.f32 %v977_v0, %v877_v42  ;;  %v1576_v52 = vmul.f32 %v3241_v27, %v1540_v25  ;;  %v3737_v32 = vld [vmem:[#allocation2 + $0x110] sm:$0xff] }
 0x14f   : > { %2766 = vmatprep.mubr.msk.f32.mxu0 %vm333_vm1, %v1777_v29  ;;  %v1508_v23 = vadd.f32 %v1476_v54, %v1407_v59  ;;  %v1676_v47 = vmul.f32 %v3243_v28, %v1640_v26  ;;  %v1376_v39 = vmul.f32 %v1639_v22, %v3235_v17  ;;  %v1477_v50 = vmul.f32 %v3249_v33, %v3701_v51 }
 0x150   : > { %v1746_v45 = vadd.f32 %v3305_v37, %v1707_v30  ;;  %v1308_v34 = vadd.f32 %v1276_v46, %v1208_v24  ;;  %v1109_v11 = vadd.f32 %v1077_v56, %v1009_v6  ;;  %v1577_v35 = vmul.f32 %v3241_v27, %v3704_v49  ;;  %v3745_v46 = vld [vmem:[#allocation2 + $0x112] sm:$0xff] }
 0x151   : > { %v1608_v13 = vadd.f32 %v1576_v52, %v1508_v23  ;;  %v878_v60 = vmul.f32 %v1439_v40, %v3202_v43  ;;  %v978_v55 = vmul.f32 %v1539_v53, %v3204_v44  ;;  %v1277_v61 = vmul.f32 %v1540_v25, %v3233_v15 }
 0x152   : > { %v1778_v57 = vmax.f32 %v1746_v45, 0.0  ;;  %v1408_v16 = vadd.f32 %v1376_v39, %v1308_v34  ;;  %v1209_v20 = vadd.f32 %v1177_v36, %v1109_v11  ;;  %v1078_v2 = vmul.f32 %v1639_v22, %v3210_v58 }
 0x153   : > { %v1708_v7 = vadd.f32 %v1676_v47, %v1608_v13  ;;  %v1010_v3 = vadd.f32 %v978_v55, %v878_v60  ;;  %v1178_v12 = vmul.f32 %v3701_v51, %v3231_v14  ;;  %v1677_v53 = vmul.f32 %v3243_v28, %v1641_v10 }
 0x154   : > { %2767 = vmatmul.mubr.msk.f32.gmra.mrb[46].mxu0 %vm333_vm1, %v1778_v57  ;;  %v1509_v40 = vadd.f32 %v1477_v50, %v1408_v16  ;;  %v1309_v18 = vadd.f32 %v1277_v61, %v1209_v20  ;;  %v1377_v63 = vmul.f32 %v1640_v26, %v3235_v17  ;;  %v1478_v8 = vmul.f32 %v3249_v33, %v3720_v62  ;;  %v3761_v50 = vld [vmem:[#allocation2 + $0x120] sm:$0xff] }
 0x155   : > { %v1747_v1 = vadd.f32 %v3305_v37, %v1708_v7  ;;  %v1110_v5 = vadd.f32 %v1078_v2, %v1010_v3  ;;  %v879_v22 = vmul.f32 %v3685_v38, %v3202_v43  ;;  %v1578_v31 = vmul.f32 %v3241_v27, %v3722_v19  ;;  %v3743_v38 = vld [vmem:[#allocation2 + $0x111] sm:$0xff]  ;;  %v2950_v2 = vld [vmem:[%s4157_s7] sm:$0xf] }
 0x156   : > { %v1609_v48 = vadd.f32 %v1577_v35, %v1509_v40  ;;  %v1409_v9 = vadd.f32 %v1377_v63, %v1309_v18  ;;  %v979_v54 = vmul.f32 %v1540_v25, %v3204_v44  ;;  %v1278_v42 = vmul.f32 %v3704_v49, %v3233_v15  ;;  %v1644_v40 = vld [vmem:[#allocation2 + $0x122] sm:$0xff] }
 0x157   : > { %v1779_v41 = vmax.f32 %v1747_v1, 0.0  ;;  %v1210_v4 = vadd.f32 %v1178_v12, %v1110_v5  ;;  %v1079_v0 = vmul.f32 %v1640_v26, %v3210_v58  ;;  %v1179_v30 = vmul.f32 %v3720_v62, %v3231_v14  ;;  %v1544_v12 = vld [vmem:[#allocation2 + $0x121] sm:$0xff] }
 0x158   : > { %v1709_v29 = vadd.f32 %v1677_v53, %v1609_v48  ;;  %v1510_v59 = vadd.f32 %v1478_v8, %v1409_v9  ;;  %v1011_v56 = vadd.f32 %v979_v54, %v879_v22  ;;  %v1678_v25 = vmul.f32 %v3243_v28, %v1642_v21  ;;  %v3785_v5 = vld [vmem:[#allocation2 + $0x128] sm:$0xff] }
 0x159   : > { %2769 = vmatprep.mubr.msk.f32.mxu1 %vm333_vm1, %v1779_v41  ;;  %v1310_v24 = vadd.f32 %v1278_v42, %v1210_v4  ;;  %v1378_v6 = vmul.f32 %v1641_v10, %v3235_v17  ;;  %v1479_v26 = vmul.f32 %v3249_v33, %v3737_v32  ;;  %v880_v47 = vmul.f32 %v3701_v51, %v3202_v43 }
 0x15a   : > { %v1748_v36 = vadd.f32 %v3305_v37, %v1709_v29  ;;  %v1610_v23 = vadd.f32 %v1578_v31, %v1510_v59  ;;  %v1111_v52 = vadd.f32 %v1079_v0, %v1011_v56  ;;  %v1579_v45 = vmul.f32 %v3241_v27, %v3743_v38  ;;  %v3788_v31 = vld [vmem:[#allocation2 + $0x129] sm:$0xff] }
 0x15b   : > { %v1410_v39 = vadd.f32 %v1378_v6, %v1310_v24  ;;  %v1679_v34 = vmul.f32 %v3243_v28, %v3745_v46  ;;  %v980_v11 = vmul.f32 %v3704_v49, %v3204_v44  ;;  %v1279_v55 = vmul.f32 %v3722_v19, %v3233_v15  ;;  %v1645_v24 = vld [vmem:[#allocation2 + $0x12a] sm:$0xff] }
 0x15c   : > { %v1780_v13 = vmax.f32 %v1748_v36, 0.0  ;;  %v1710_v35 = vadd.f32 %v1678_v25, %v1610_v23  ;;  %v1211_v60 = vadd.f32 %v1179_v30, %v1111_v52  ;;  %v1080_v16 = vmul.f32 %v1641_v10, %v3210_v58 }
 0x15d   : > { %v1511_v57 = vadd.f32 %v1479_v26, %v1410_v39  ;;  %v1012_v51 = vadd.f32 %v980_v11, %v880_v47  ;;  %v1180_v20 = vmul.f32 %v3737_v32, %v3231_v14  ;;  %v1379_v49 = vmul.f32 %v1642_v21, %v3235_v17  ;;  %v1446_v39 = vld [vmem:[#allocation2 + $0x138] sm:$0xff] }
 0x15e   : > { %2770 = vmatmul.mubr.msk.f32.vlgmr.msra.gmra.mrb[0].mxu1 %vm333_vm1, %v1780_v13  ;;  %v1749_v61 = vadd.f32 %v3305_v37, %v1710_v35  ;;  %v1311_v7 = vadd.f32 %v1279_v55, %v1211_v60  ;;  %v1480_v3 = vmul.f32 %v3249_v33, %v3761_v50  ;;  %v881_v18 = vmul.f32 %v3720_v62, %v3202_v43 }
 0x15f   : > { %2794 = vmatpush3.msk.msra.mxu1 %vm526_vm0, %v2950_v2  ;;  %v1611_v10 = vadd.f32 %v1579_v45, %v1511_v57  ;;  %v1112_v53 = vadd.f32 %v1080_v16, %v1012_v51  ;;  %v981_v37 = vmul.f32 %v3722_v19, %v3204_v44  ;;  %v1280_v8 = vmul.f32 %v3743_v38, %v3233_v15 }
 0x160   : > { %v1781_v63 = vmax.f32 %v1749_v61, 0.0  ;;  %v1411_v1 = vadd.f32 %v1379_v49, %v1311_v7  ;;  %v1081_v22 = vmul.f32 %v1642_v21, %v3210_v58  ;;  %v1181_v62 = vmul.f32 %v3761_v50, %v3231_v14  ;;  %v3800_v21 = vld [vmem:[%s4154_s4] ss:$0 sm:$0xff] }
 0x161   : > { %v1711_v48 = vadd.f32 %v1679_v34, %v1611_v10  ;;  %v1212_v9 = vadd.f32 %v1180_v20, %v1112_v53  ;;  %v1013_v54 = vadd.f32 %v981_v37, %v881_v18  ;;  %v1580_v41 = vmul.f32 %v3241_v27, %v1544_v12  ;;  %v1546_v34 = vld [vmem:[#allocation2 + $0x139] sm:$0xff] }
 0x162   : > { %2772 = vmatprep.mubr.msk.f32.mxu1 %vm333_vm1, %v1781_v63  ;;  %v1512_v19 = vadd.f32 %v1480_v3, %v1411_v1  ;;  %v1680_v4 = vmul.f32 %v3243_v28, %v1644_v40  ;;  %v1380_v42 = vmul.f32 %v3745_v46, %v3235_v17  ;;  %v1481_v59 = vmul.f32 %v3249_v33, %v3785_v5  ;;  %v1646_v49 = vld [vmem:[#allocation2 + $0x13a] sm:$0xff] }
 0x163   : > { %v1750_v0 = vadd.f32 %v3800_v21, %v1711_v48  ;;  %v1312_v29 = vadd.f32 %v1280_v8, %v1212_v9  ;;  %v1113_v56 = vadd.f32 %v1081_v22, %v1013_v54  ;;  %v1581_v25 = vmul.f32 %v3241_v27, %v3788_v31  ;;  %v3824_v3 = vld [vmem:[#allocation2 + $0x140] sm:$0xff] }
 0x164   : > { %v1612_v30 = vadd.f32 %v1580_v41, %v1512_v19  ;;  %v882_v6 = vmul.f32 %v3737_v32, %v3202_v43  ;;  %v982_v26 = vmul.f32 %v3743_v38, %v3204_v44  ;;  %v1281_v47 = vmul.f32 %v1544_v12, %v3233_v15  ;;  %v1547_v8 = vld [vmem:[#allocation2 + $0x141] sm:$0xff] }
 0x165   : > { %v1782_v36 = vmax.f32 %v1750_v0, 0.0  ;;  %v1412_v23 = vadd.f32 %v1380_v42, %v1312_v29  ;;  %v1213_v52 = vadd.f32 %v1181_v62, %v1113_v56  ;;  %v1082_v13 = vmul.f32 %v3745_v46, %v3210_v58 }
 0x166   : > { %v1712_v45 = vadd.f32 %v1680_v4, %v1612_v30  ;;  %v1014_v11 = vadd.f32 %v982_v26, %v882_v6  ;;  %v1182_v35 = vmul.f32 %v3785_v5, %v3231_v14  ;;  %v1681_v38 = vmul.f32 %v3243_v28, %v1645_v24 }
 0x167   : > { %2773 = vmatmul.mubr.msk.f32.gmra.mrb[2].mxu1 %vm333_vm1, %v1782_v36  ;;  %v1513_v32 = vadd.f32 %v1481_v59, %v1412_v23  ;;  %v1313_v60 = vadd.f32 %v1281_v47, %v1213_v52  ;;  %v1381_v55 = vmul.f32 %v1644_v40, %v3235_v17  ;;  %v1482_v51 = vmul.f32 %v3249_v33, %v1446_v39  ;;  %v3844_v59 = vld [vmem:[#allocation2 + $0x150] sm:$0xff] }
 0x168   : > { %v1751_v57 = vadd.f32 %v3800_v21, %v1712_v45  ;;  %v1114_v16 = vadd.f32 %v1082_v13, %v1014_v11  ;;  %v883_v20 = vmul.f32 %v3761_v50, %v3202_v43  ;;  %v1582_v7 = vmul.f32 %v3241_v27, %v1546_v34  ;;  %v3830_v50 = vld [vmem:[#allocation2 + $0x142] sm:$0xff] }
 0x169   : > { %v1613_v46 = vadd.f32 %v1581_v25, %v1513_v32  ;;  %v1413_v61 = vadd.f32 %v1381_v55, %v1313_v60  ;;  %v983_v2 = vmul.f32 %v1544_v12, %v3204_v44  ;;  %v1282_v18 = vmul.f32 %v3788_v31, %v3233_v15  ;;  %v1648_v32 = vld [vmem:[#allocation2 + $0x152] sm:$0xff] }
 0x16a   : > { %v1783_v10 = vmax.f32 %v1751_v57, 0.0  ;;  %v1214_v53 = vadd.f32 %v1182_v35, %v1114_v16  ;;  %v1083_v37 = vmul.f32 %v1644_v40, %v3210_v58  ;;  %v1183_v48 = vmul.f32 %v1446_v39, %v3231_v14  ;;  %v1548_v35 = vld [vmem:[#allocation2 + $0x151] sm:$0xff] }
 0x16b   : > { %v1713_v63 = vadd.f32 %v1681_v38, %v1613_v46  ;;  %v1514_v1 = vadd.f32 %v1482_v51, %v1413_v61  ;;  %v1015_v22 = vadd.f32 %v983_v2, %v883_v20  ;;  %v1682_v9 = vmul.f32 %v3243_v28, %v1646_v49  ;;  %v3860_v16 = vld [vmem:[#allocation2 + $0x158] sm:$0xff] }
 0x16c   : > { %2775 = vmatprep.mubr.msk.f32.mxu1 %vm333_vm1, %v1783_v10  ;;  %v1314_v12 = vadd.f32 %v1282_v18, %v1214_v53  ;;  %v1382_v54 = vmul.f32 %v1645_v24, %v3235_v17  ;;  %v1483_v62 = vmul.f32 %v3249_v33, %v3824_v3  ;;  %v884_v4 = vmul.f32 %v3785_v5, %v3202_v43 }
 0x16d   : > { %v1752_v40 = vadd.f32 %v3800_v21, %v1713_v63  ;;  %v1614_v19 = vadd.f32 %v1582_v7, %v1514_v1  ;;  %v1115_v41 = vadd.f32 %v1083_v37, %v1015_v22  ;;  %v1583_v0 = vmul.f32 %v3241_v27, %v1547_v8  ;;  %v3863_v7 = vld [vmem:[#allocation2 + $0x159] sm:$0xff] }
 0x16e   : > { %v1414_v42 = vadd.f32 %v1382_v54, %v1314_v12  ;;  %v1683_v29 = vmul.f32 %v3243_v28, %v3830_v50  ;;  %v984_v56 = vmul.f32 %v3788_v31, %v3204_v44  ;;  %v1283_v26 = vmul.f32 %v1546_v34, %v3233_v15 }
 0x16f   : > { %v1784_v30 = vmax.f32 %v1752_v40, 0.0  ;;  %v1714_v25 = vadd.f32 %v1682_v9, %v1614_v19  ;;  %v1215_v6 = vadd.f32 %v1183_v48, %v1115_v41  ;;  %v1084_v5 = vmul.f32 %v1645_v24, %v3210_v58  ;;  %v1649_v9 = vld [vmem:[#allocation2 + $0x15a] sm:$0xff] }
 0x170   : > { %v1515_v36 = vadd.f32 %v1483_v62, %v1414_v42  ;;  %v1016_v23 = vadd.f32 %v984_v56, %v884_v4  ;;  %v1184_v52 = vmul.f32 %v3824_v3, %v3231_v14  ;;  %v1383_v11 = vmul.f32 %v1646_v49, %v3235_v17  ;;  %v1450_v4 = vld [vmem:[#allocation2 + $0x168] sm:$0xff] }
 0x171   : > { %2776 = vmatmul.mubr.msk.f32.gmra.mrb[4].mxu1 %vm333_vm1, %v1784_v30  ;;  %v1753_v47 = vadd.f32 %v3800_v21, %v1714_v25  ;;  %v1315_v45 = vadd.f32 %v1283_v26, %v1215_v6  ;;  %v1484_v31 = vmul.f32 %v3249_v33, %v3844_v59  ;;  %v885_v60 = vmul.f32 %v1446_v39, %v3202_v43 }
 0x172   : > { %v1615_v13 = vadd.f32 %v1583_v0, %v1515_v36  ;;  %v1116_v38 = vadd.f32 %v1084_v5, %v1016_v23  ;;  %v985_v24 = vmul.f32 %v1546_v34, %v3204_v44  ;;  %v1284_v51 = vmul.f32 %v1547_v8, %v3233_v15  ;;  %v1550_v0 = vld [vmem:[#allocation2 + $0x169] sm:$0xff] }
 0x173   : > { %v1785_v55 = vmax.f32 %v1753_v47, 0.0  ;;  %v1415_v57 = vadd.f32 %v1383_v11, %v1315_v45  ;;  %v1085_v20 = vmul.f32 %v1646_v49, %v3210_v58  ;;  %v1185_v10 = vmul.f32 %v3844_v59, %v3231_v14  ;;  %v1650_v45 = vld [vmem:[#allocation2 + $0x16a] sm:$0xff] }
 0x174   : > { %v1715_v46 = vadd.f32 %v1683_v29, %v1615_v13  ;;  %v1216_v61 = vadd.f32 %v1184_v52, %v1116_v38  ;;  %v1017_v2 = vadd.f32 %v985_v24, %v885_v60  ;;  %v1584_v34 = vmul.f32 %v3241_v27, %v1548_v35  ;;  %v3893_v11 = vld [vmem:[#allocation2 + $0x170] sm:$0xff] }
 0x175   : > { %2778 = vmatprep.mubr.msk.f32.mxu1 %vm333_vm1, %v1785_v55  ;;  %v1516_v39 = vadd.f32 %v1484_v31, %v1415_v57  ;;  %v1684_v53 = vmul.f32 %v3243_v28, %v1648_v32  ;;  %v1384_v18 = vmul.f32 %v3830_v50, %v3235_v17  ;;  %v1485_v63 = vmul.f32 %v3249_v33, %v3860_v16 }
 0x176   : > { %v1754_v49 = vadd.f32 %v3800_v21, %v1715_v46  ;;  %v1316_v37 = vadd.f32 %v1284_v51, %v1216_v61  ;;  %v1117_v1 = vadd.f32 %v1085_v20, %v1017_v2  ;;  %v1585_v48 = vmul.f32 %v3241_v27, %v3863_v7  ;;  %v1551_v51 = vld [vmem:[#allocation2 + $0x171] sm:$0xff] }
 0x177   : > { %v1616_v22 = vadd.f32 %v1584_v34, %v1516_v39  ;;  %v886_v12 = vmul.f32 %v3824_v3, %v3202_v43  ;;  %v986_v54 = vmul.f32 %v1547_v8, %v3204_v44  ;;  %v1285_v41 = vmul.f32 %v1548_v35, %v3233_v15 }
 0x178   : > { %v1786_v62 = vmax.f32 %v1754_v49, 0.0  ;;  %v1416_v40 = vadd.f32 %v1384_v18, %v1316_v37  ;;  %v1217_v19 = vadd.f32 %v1185_v10, %v1117_v1  ;;  %v1086_v56 = vmul.f32 %v3830_v50, %v3210_v58 }
 0x179   : > { %v1716_v42 = vadd.f32 %v1684_v53, %v1616_v22  ;;  %v1018_v29 = vadd.f32 %v986_v54, %v886_v12  ;;  %v1186_v30 = vmul.f32 %v3860_v16, %v3231_v14  ;;  %v1685_v8 = vmul.f32 %v3243_v28, %v1649_v9 }
 0x17a   : > { %2779 = vmatmul.mubr.msk.f32.gmra.mrb[6].mxu1 %vm333_vm1, %v1786_v62  ;;  %v1517_v3 = vadd.f32 %v1485_v63, %v1416_v40  ;;  %v1317_v25 = vadd.f32 %v1285_v41, %v1217_v19  ;;  %v1385_v6 = vmul.f32 %v1648_v32, %v3235_v17  ;;  %v1486_v36 = vmul.f32 %v3249_v33, %v1450_v4  ;;  %v1452_v63 = vld [vmem:[#allocation2 + $0x180] sm:$0xff] }
 0x17b   : > { %v1755_v26 = vadd.f32 %v3800_v21, %v1716_v42  ;;  %v1118_v23 = vadd.f32 %v1086_v56, %v1018_v29  ;;  %v887_v5 = vmul.f32 %v3844_v59, %v3202_v43  ;;  %v1586_v47 = vmul.f32 %v3241_v27, %v1550_v0  ;;  %v3899_v59 = vld [vmem:[#allocation2 + $0x172] sm:$0xff] }
 0x17c   : > { %v1617_v50 = vadd.f32 %v1585_v48, %v1517_v3  ;;  %v1417_v52 = vadd.f32 %v1385_v6, %v1317_v25  ;;  %v987_v31 = vmul.f32 %v1548_v35, %v3204_v44  ;;  %v1286_v60 = vmul.f32 %v3863_v7, %v3233_v15  ;;  %v1652_v3 = vld [vmem:[#allocation2 + $0x182] sm:$0xff] }
 0x17d   : > { %v1787_v13 = vmax.f32 %v1755_v26, 0.0  ;;  %v1218_v38 = vadd.f32 %v1186_v30, %v1118_v23  ;;  %v1087_v24 = vmul.f32 %v1648_v32, %v3210_v58  ;;  %v1187_v46 = vmul.f32 %v1450_v4, %v3231_v14  ;;  %v1552_v30 = vld [vmem:[#allocation2 + $0x181] sm:$0xff] }
 0x17e   : > { %v1717_v55 = vadd.f32 %v1685_v8, %v1617_v50  ;;  %v1518_v57 = vadd.f32 %v1486_v36, %v1417_v52  ;;  %v1019_v20 = vadd.f32 %v987_v31, %v887_v5  ;;  %v1686_v61 = vmul.f32 %v3243_v28, %v1650_v45  ;;  %v1453_v23 = vld [vmem:[#allocation2 + $0x188] sm:$0xff] }
 0x17f   : > { %2781 = vmatprep.mubr.msk.f32.mxu1 %vm333_vm1, %v1787_v13  ;;  %v1318_v35 = vadd.f32 %v1286_v60, %v1218_v38  ;;  %v1386_v2 = vmul.f32 %v1649_v9, %v3235_v17  ;;  %v1487_v10 = vmul.f32 %v3249_v33, %v3893_v11  ;;  %v888_v53 = vmul.f32 %v3860_v16, %v3202_v43 }
 0x180   : > { %v1756_v32 = vadd.f32 %v3800_v21, %v1717_v55  ;;  %v1618_v39 = vadd.f32 %v1586_v47, %v1518_v57  ;;  %v1119_v34 = vadd.f32 %v1087_v24, %v1019_v20  ;;  %v1587_v49 = vmul.f32 %v3241_v27, %v1551_v51  ;;  %v1553_v47 = vld [vmem:[#allocation2 + $0x189] sm:$0xff] }
 0x181   : > { %v1418_v18 = vadd.f32 %v1386_v2, %v1318_v35  ;;  %v1687_v37 = vmul.f32 %v3243_v28, %v3899_v59  ;;  %v988_v1 = vmul.f32 %v3863_v7, %v3204_v44  ;;  %v1287_v54 = vmul.f32 %v1550_v0, %v3233_v15 }
 0x182   : > { %v1788_v22 = vmax.f32 %v1756_v32, 0.0  ;;  %v1718_v48 = vadd.f32 %v1686_v61, %v1618_v39  ;;  %v1219_v12 = vadd.f32 %v1187_v46, %v1119_v34  ;;  %v1088_v19 = vmul.f32 %v1649_v9, %v3210_v58  ;;  %v1454_v61 = vld [vmem:[#allocation2 + $0x198] sm:$0xff] }
 0x183   : > { %v1519_v62 = vadd.f32 %v1487_v10, %v1418_v18  ;;  %v1020_v40 = vadd.f32 %v988_v1, %v888_v53  ;;  %v1188_v16 = vmul.f32 %v3893_v11, %v3231_v14  ;;  %v1387_v29 = vmul.f32 %v1650_v45, %v3235_v17  ;;  %v1653_v18 = vld [vmem:[#allocation2 + $0x18a] sm:$0xff] }
 0x184   : > { %2782 = vmatmul.mubr.msk.f32.gmra.mrb[8].mxu1 %vm333_vm1, %v1788_v22  ;;  %v1757_v41 = vadd.f32 %v3800_v21, %v1718_v48  ;;  %v1319_v42 = vadd.f32 %v1287_v54, %v1219_v12  ;;  %v1488_v7 = vmul.f32 %v3249_v33, %v1452_v63  ;;  %v889_v25 = vmul.f32 %v1450_v4, %v3202_v43  ;;  %v1654_v48 = vld [vmem:[#allocation2 + $0x19a] sm:$0xff] }
 0x185   : > { %v1619_v56 = vadd.f32 %v1587_v49, %v1519_v62  ;;  %v1120_v8 = vadd.f32 %v1088_v19, %v1020_v40  ;;  %v989_v9 = vmul.f32 %v1550_v0, %v3204_v44  ;;  %v1288_v36 = vmul.f32 %v1551_v51, %v3233_v15  ;;  %v1554_v49 = vld [vmem:[#allocation2 + $0x199] sm:$0xff] }
 0x186   : > { %v1789_v6 = vmax.f32 %v1757_v41, 0.0  ;;  %v1419_v26 = vadd.f32 %v1387_v29, %v1319_v42  ;;  %v1089_v5 = vmul.f32 %v1650_v45, %v3210_v58  ;;  %v1189_v13 = vmul.f32 %v1452_v63, %v3231_v14 }
 0x187   : > { %v1719_v50 = vadd.f32 %v1687_v37, %v1619_v56  ;;  %v1220_v52 = vadd.f32 %v1188_v16, %v1120_v8  ;;  %v1021_v31 = vadd.f32 %v989_v9, %v889_v25  ;;  %v1588_v4 = vmul.f32 %v3241_v27, %v1552_v30  ;;  %v1655_v9 = vld [vmem:[#allocation2 + $0x1a2] sm:$0xff] }
 0x188   : > { %2784 = vmatprep.mubr.msk.f32.mxu1 %vm333_vm1, %v1789_v6  ;;  %v1520_v38 = vadd.f32 %v1488_v7, %v1419_v26  ;;  %v1688_v0 = vmul.f32 %v3243_v28, %v1652_v3  ;;  %v1388_v60 = vmul.f32 %v3899_v59, %v3235_v17  ;;  %v1489_v45 = vmul.f32 %v3249_v33, %v1453_v23  ;;  %v1555_v7 = vld [vmem:[#allocation2 + $0x1a1] sm:$0xff] }
 0x189   : > { %v1758_v24 = vadd.f32 %v3800_v21, %v1719_v50  ;;  %v1320_v55 = vadd.f32 %v1288_v36, %v1220_v52  ;;  %v1121_v57 = vadd.f32 %v1089_v5, %v1021_v31  ;;  %v1589_v46 = vmul.f32 %v3241_v27, %v1553_v47  ;;  %v2953_v31 = vld [vmem:[%s3118_s16 + $0x8] sm:$0xff] }
 0x18a   : > { %v1620_v20 = vadd.f32 %v1588_v4, %v1520_v38  ;;  %v890_v35 = vmul.f32 %v3893_v11, %v3202_v43  ;;  %v990_v2 = vmul.f32 %v1551_v51, %v3204_v44  ;;  %v1289_v34 = vmul.f32 %v1552_v30, %v3233_v15  ;;  %v2955_v38 = vld [vmem:[%s3118_s16 + $0x18] sm:$0xff]  ;;  %v2957_v4 = vld [vmem:[%s3118_s16 + $0x28] sm:$0xff] }
 0x18b   : > { %v1790_v10 = vmax.f32 %v1758_v24, 0.0  ;;  %v1420_v32 = vadd.f32 %v1388_v60, %v1320_v55  ;;  %v1221_v39 = vadd.f32 %v1189_v13, %v1121_v57  ;;  %v1090_v63 = vmul.f32 %v3899_v59, %v3210_v58  ;;  %v1455_v59 = vld [vmem:[#allocation2 + $0x1a0] sm:$0xff]  ;;  %v2954_v13 = vld [vmem:[%s3118_s16 + $0x10] sm:$0xff]  ;;  %v2959_v60 = vld [vmem:[%s3118_s16 + $0x38] sm:$0xff] }
 0x18c   : > { %v1720_v53 = vadd.f32 %v1688_v0, %v1620_v20  ;;  %v1022_v37 = vadd.f32 %v990_v2, %v890_v35  ;;  %v1190_v1 = vmul.f32 %v1453_v23, %v3231_v14  ;;  %v1389_v44 = vmul.f32 %v1652_v3, %v3235_v17  ;;  %v2958_v0 = vld [vmem:[%s3118_s16 + $0x30] sm:$0xff]  ;;  %v2960_v24 = vld [vmem:[%s3118_s16 + $0x40] sm:$0xff]  ;;  %v2961_v55 = vld [vmem:[%s3118_s16 + $0x48] sm:$0xff] }
 0x18d   : > { %2785 = vmatmul.mubr.msk.f32.gmra.mrb[10].mxu1 %vm333_vm1, %v1790_v10  ;;  %v1521_v22 = vadd.f32 %v1489_v45, %v1420_v32  ;;  %v1321_v43 = vadd.f32 %v1289_v34, %v1221_v39  ;;  %v1490_v11 = vmul.f32 %v3249_v33, %v1454_v61  ;;  %v1689_v62 = vmul.f32 %v3243_v28, %v1653_v18  ;;  %v2962_v45 = vld [vmem:[%s3118_s16 + $0x50] sm:$0xff]  ;;  %v2963_v57 = vld [vmem:[%s3118_s16 + $0x58] sm:$0xff]  ;;  %v2964_v20 = vld [vmem:[%s3118_s16 + $0x60] sm:$0xff] }
 0x18e   : > { %v1759_v51 = vadd.f32 %v3800_v21, %v1720_v53  ;;  %v1122_v12 = vadd.f32 %v1090_v63, %v1022_v37  ;;  %v1590_v58 = vmul.f32 %v3241_v27, %v1554_v49  ;;  %v1290_v16 = vmul.f32 %v1553_v47, %v3233_v15  ;;  %v2966_v61 = vld [vmem:[%s3118_s16 + $0x70] sm:$0xff]  ;;  %v2967_v35 = vld [vmem:[%s3118_s16 + $0x78] sm:$0xff]  ;;  %v2968_v2 = vld [vmem:[%s3118_s16 + $0x80] sm:$0xff] }
 0x18f   : > { %v1621_v54 = vadd.f32 %v1589_v46, %v1521_v22  ;;  %v1421_v40 = vadd.f32 %v1389_v44, %v1321_v43  ;;  %v1690_v29 = vmul.f32 %v3243_v28, %v1654_v48  ;;  %v1390_v30 = vmul.f32 %v1653_v18, %v3235_v17  ;;  %v2965_v46 = vld [vmem:[%s3118_s16 + $0x68] sm:$0xff]  ;;  %v2970_v32 = vld [vmem:[%s3118_s16 + $0x90] sm:$0xff]  ;;  %v2971_v39 = vld [vmem:[%s3118_s16 + $0x98] sm:$0xff] }
 0x190   : > { %v1791_v14 = vmax.f32 %v1759_v51, 0.0  ;;  %v1222_v19 = vadd.f32 %v1190_v1, %v1122_v12  ;;  %v1491_v3 = vmul.f32 %v3249_v33, %v1455_v59  ;;  %v1591_v15 = vmul.f32 %v3241_v27, %v1555_v7  ;;  %v2969_v10 = vld [vmem:[%s3118_s16 + $0x88] sm:$0xff]  ;;  %v2972_v34 = vld [vmem:[%s3118_s16 + $0xa0] sm:$0xff]  ;;  %v2974_v18 = vld [vmem:[%s3118_s16 + $0xb0] sm:$0xff] }
 0x191   : > { %v1721_v41 = vadd.f32 %v1689_v62, %v1621_v54  ;;  %v1522_v42 = vadd.f32 %v1490_v11, %v1421_v40  ;;  %v1691_v5 = vmul.f32 %v3243_v28, %v1655_v9  ;;  %v2952_v28 = vld [vmem:[%s3118_s16] sm:$0xff]  ;;  %v2973_v53 = vld [vmem:[%s3118_s16 + $0xa8] sm:$0xff]  ;;  %v2975_v49 = vld [vmem:[%s3118_s16 + $0xb8] sm:$0xff] }
 0x192   : > { %2787 = vmatprep.mubr.msk.f32.mxu1 %vm333_vm1, %v1791_v14  ;;  %v1322_v56 = vadd.f32 %v1290_v16, %v1222_v19  ;;  %v2976_v37 = vld [vmem:[%s3118_s16 + $0xc0] sm:$0xff]  ;;  %v2977_v63 = vld [vmem:[%s3118_s16 + $0xc8] sm:$0xff]  ;;  %v2978_v1 = vld [vmem:[%s3118_s16 + $0xd0] sm:$0xff] }
 0x193   : > { %v1760_v8 = vadd.f32 %v3800_v21, %v1721_v41  ;;  %v1622_v25 = vadd.f32 %v1590_v58, %v1522_v42  ;;  %v2979_v22 = vld [vmem:[%s3118_s16 + $0xd8] sm:$0xff]  ;;  %v2980_v44 = vld [vmem:[%s3118_s16 + $0xe0] sm:$0xff]  ;;  %v2981_v51 = vld [vmem:[%s3118_s16 + $0xe8] sm:$0xff] }
 0x194   : > { %v1422_v6 = vadd.f32 %v1390_v30, %v1322_v56  ;;  %v2982_v48 = vld [vmem:[%s3118_s16 + $0xf0] sm:$0xff]  ;;  %v2983_v12 = vld [vmem:[%s3118_s16 + $0xf8] sm:$0xff] }
 0x195   : > { %v1792_v26 = vmax.f32 %v1760_v8, 0.0  ;;  %v1722_v36 = vadd.f32 %v1690_v29, %v1622_v25 }
 0x196   : > { %v1523_v23 = vadd.f32 %v1491_v3, %v1422_v6  ;;  %v4033_v3 = vld [vmem:[%s4156_s6] ss:$0 sm:$0xff] }
 0x197   : > { %2788 = vmatmul.mubr.msk.f32.gmra.mrb[12].mxu1 %vm333_vm1, %v1792_v26  ;;  %v1761_v17 = vadd.f32 %v3800_v21, %v1722_v36  ;;  %v4042_v26 = vld [vmem:[%s4158_s8] ss:$0 sm:$0xff] }
 0x198   : > { %v1623_v33 = vadd.f32 %v1591_v15, %v1523_v23 }
 0x199   : > { %v1793_v50 = vmax.f32 %v1761_v17, 0.0 }
 0x19a   : > { %v1723_v52 = vadd.f32 %v1691_v5, %v1623_v33 }
 0x19b   : > { %2790 = vmatprep.mubr.msk.f32.mxu1 %vm333_vm1, %v1793_v50 }
 0x19c   : > { %v1762_v27 = vadd.f32 %v3800_v21, %v1723_v52  ;;  %v2956_v21 = vld [vmem:[%s3118_s16 + $0x20] sm:$0xff] }
 0x19e   : > { %v1794_v47 = vmax.f32 %v1762_v27, 0.0 }
 0x1a0   : > { %2791 = vmatmul.mubr.msk.f32.gmra.mrb[14].mxu1 %vm333_vm1, %v1794_v47 }
 0x1a1   : > { %2795 = vmatprep.mubr.msk.f32.mxu1 %vm429_vm3, %v2952_v28 }
 0x1a4   : > { %2796 = vmatmul.mubr.msk.f32.vlgmr.msra.gmra.mrb[16].mxu1 %vm429_vm3, %v2953_v31 }
 0x1a5   : > { %2798 = vmatprep.mubr.msk.f32.mxu1 %vm429_vm3, %v2954_v13 }
 0x1a8   : > { %2799 = vmatmul.mubr.msk.f32.gmra.mrb[18].mxu1 %vm429_vm3, %v2955_v38 }
 0x1a9   : > { %2801 = vmatprep.mubr.msk.f32.mxu1 %vm429_vm3, %v2956_v21 }
 0x1ac   : > { %2802 = vmatmul.mubr.msk.f32.gmra.mrb[20].mxu1 %vm429_vm3, %v2957_v4 }
 0x1ad   : > { %2804 = vmatprep.mubr.msk.f32.mxu1 %vm429_vm3, %v2958_v0 }
 0x1b0   : > { %2805 = vmatmul.mubr.msk.f32.gmra.mrb[22].mxu1 %vm429_vm3, %v2959_v60 }
 0x1b1   : > { %2807 = vmatprep.mubr.msk.f32.mxu1 %vm429_vm3, %v2960_v24 }
 0x1b4   : > { %2808 = vmatmul.mubr.msk.f32.gmra.mrb[24].mxu1 %vm429_vm3, %v2961_v55 }
 0x1b5   : > { %2810 = vmatprep.mubr.msk.f32.mxu1 %vm429_vm3, %v2962_v45 }
 0x1b8   : > { %2811 = vmatmul.mubr.msk.f32.gmra.mrb[26].mxu1 %vm429_vm3, %v2963_v57 }
 0x1b9   : > { %2813 = vmatprep.mubr.msk.f32.mxu1 %vm429_vm3, %v2964_v20 }
 0x1bc   : > { %2814 = vmatmul.mubr.msk.f32.gmra.mrb[28].mxu1 %vm429_vm3, %v2965_v46 }
 0x1bd   : > { %2816 = vmatprep.mubr.msk.f32.mxu1 %vm429_vm3, %v2966_v61 }
 0x1c0   : > { %2817 = vmatmul.mubr.msk.f32.gmra.mrb[30].mxu1 %vm429_vm3, %v2967_v35 }
 0x1c1   : > { %2819 = vmatprep.mubr.msk.f32.mxu1 %vm429_vm3, %v2968_v2 }
 0x1c4   : > { %2820 = vmatmul.mubr.msk.f32.gmra.mrb[0].mxu1 %vm429_vm3, %v2969_v10 }
 0x1c5   : > { %2822 = vmatprep.mubr.msk.f32.mxu1 %vm429_vm3, %v2970_v32 }
 0x1c8   : > { %2823 = vmatmul.mubr.msk.f32.gmra.mrb[2].mxu1 %vm429_vm3, %v2971_v39 }
 0x1c9   : > { %2825 = vmatprep.mubr.msk.f32.mxu1 %vm429_vm3, %v2972_v34 }
 0x1cc   : > { %2826 = vmatmul.mubr.msk.f32.gmra.mrb[4].mxu1 %vm429_vm3, %v2973_v53 }
 0x1cd   : > { %2828 = vmatprep.mubr.msk.f32.mxu1 %vm429_vm3, %v2974_v18 }
 0x1d0   : > { %2829 = vmatmul.mubr.msk.f32.gmra.mrb[6].mxu1 %vm429_vm3, %v2975_v49 }
 0x1d1   : > { %2831 = vmatprep.mubr.msk.f32.mxu1 %vm429_vm3, %v2976_v37 }
 0x1d4   : > { %2832 = vmatmul.mubr.msk.f32.gmra.mrb[8].mxu1 %vm429_vm3, %v2977_v63 }
 0x1d5   : > { %2834 = vmatprep.mubr.msk.f32.mxu1 %vm429_vm3, %v2978_v1 }
 0x1d8   : > { %2835 = vmatmul.mubr.msk.f32.gmra.mrb[10].mxu1 %vm429_vm3, %v2979_v22 }
 0x1d9   : > { %2837 = vmatprep.mubr.msk.f32.mxu1 %vm429_vm3, %v2980_v44 }
 0x1db   : > { %v2747_v43 = vpop.f32.mrb[32].mxu0 }
 0x1dc   : > { %v1965_v11 = vpop.f32.mrb[33].mxu0  ;;  %2838 = vmatmul.mubr.msk.f32.gmra.mrb[12].mxu1 %vm429_vm3, %v2981_v51  ;;  %v1971_v8 = vadd.f32 %v2747_v43, %v4033_v3 }
 0x1dd   : > { %2840 = vmatprep.mubr.msk.f32.mxu1 %vm429_vm3, %v2982_v48  ;;  %v1966_v9 = vadd.f32 %v4033_v3, %v1965_v11 }
 0x1e0   : > { %2841 = vmatmul.mubr.msk.f32.gmra.mrb[14].mxu1 %vm429_vm3, %v2983_v12 }
 0x1e4   : > { %v2750_v54 = vpop.f32.mrb[34].mxu0 }
 0x1e5   : > { %v1975_v62 = vpop.f32.mrb[35].mxu0  ;;  %v1981_v25 = vadd.f32 %v2750_v54, %v4033_v3 }
 0x1e6   : > { %v1976_v6 = vadd.f32 %v4033_v3, %v1975_v62 }
 0x1e7   : > { %v2852_v50 = vadd.f32 %v4042_v26, %v1981_v25  ;;  %v2895_v25 = vadd.f32 %v4042_v26, %v4033_v3 }
 0x1e8   : > { %v2855_v28 = vadd.f32 %v4042_v26, %v1976_v6 }
 0x1f3   : > { %v2753_v40 = vpop.f32.mrb[36].mxu0 }
 0x1f4   : > { %v1985_v58 = vpop.f32.mrb[37].mxu0  ;;  %v1991_v17 = vadd.f32 %v2753_v40, %v4033_v3 }
 0x1f5   : > { %v1986_v52 = vadd.f32 %v4033_v3, %v1985_v58 }
 0x1f6   : > { %v2858_v4 = vadd.f32 %v4042_v26, %v1991_v17 }
 0x1f7   : > { %v2861_v24 = vadd.f32 %v4042_v26, %v1986_v52 }
 0x1fe   : > { %v2756_v59 = vpop.f32.mrb[38].mxu0 }
 0x1ff   : > { %v1995_v14 = vpop.f32.mrb[39].mxu0  ;;  %v2001_v21 = vadd.f32 %v2756_v59, %v4033_v3 }
 0x200   : > { %v1996_v0 = vadd.f32 %v4033_v3, %v1995_v14 }
 0x201   : > { %v2864_v46 = vadd.f32 %v4042_v26, %v2001_v21 }
 0x202   : > { %v2867_v2 = vadd.f32 %v4042_v26, %v1996_v0 }
 0x208   : > { %v2759_v19 = vpop.f32.mrb[40].mxu0 }
 0x209   : > { %v2005_v16 = vpop.f32.mrb[41].mxu0  ;;  %v2011_v20 = vadd.f32 %v2759_v19, %v4033_v3 }
 0x20a   : > { %v2006_v61 = vadd.f32 %v4033_v3, %v2005_v16 }
 0x20b   : > { %v2870_v53 = vadd.f32 %v4042_v26, %v2011_v20 }
 0x20c   : > { %v2873_v37 = vadd.f32 %v4042_v26, %v2006_v61 }
 0x212   : > { %v2762_v41 = vpop.f32.mrb[42].mxu0 }
 0x213   : > { %v2015_v42 = vpop.f32.mrb[43].mxu0  ;;  %v2021_v34 = vadd.f32 %v2762_v41, %v4033_v3 }
 0x214   : > { %v2016_v18 = vadd.f32 %v4033_v3, %v2015_v42 }
 0x215   : > { %v2876_v44 = vadd.f32 %v4042_v26, %v2021_v34 }
 0x216   : > { %v2879_v48 = vadd.f32 %v4042_v26, %v2016_v18 }
 0x21d   : > { %v2765_v29 = vpop.f32.mrb[44].mxu0 }
 0x21e   : > { %v2025_v7 = vpop.f32.mrb[45].mxu0  ;;  %v2031_v43 = vadd.f32 %v2765_v29, %v4033_v3 }
 0x21f   : > { %v2026_v11 = vadd.f32 %v4033_v3, %v2025_v7 }
 0x220   : > { %v2882_v58 = vadd.f32 %v4042_v26, %v2031_v43 }
 0x221   : > { %v2885_v19 = vadd.f32 %v4042_v26, %v2026_v11 }
 0x227   : > { %v4026_v56 = vpop.f32.mrb[46].mxu0 }
 0x228   : > { %v4028_v30 = vpop.f32.mrb[47].mxu0  ;;  %v2041_v40 = vadd.f32 %v4026_v56, %v4033_v3 }
 0x229   : > { %v2036_v59 = vadd.f32 %v4033_v3, %v4028_v30 }
 0x22a   : > { %v2888_v29 = vadd.f32 %v4042_v26, %v2041_v40 }
 0x22b   : > { %v2891_v56 = vadd.f32 %v4042_v26, %v2036_v59 }
 0x277   : > { %v2797_v15 = vpop.f32.mrb[16].mxu1 }
 0x278   : > { %v2846_v36 = vadd.f32 %v2797_v15, %v1971_v8  ;;  %v2201_v23 = vpop.f32.mrb[17].mxu1 }
 0x279   : > { %v2849_v5 = vadd.f32 %v2201_v23, %v1966_v9 }
 0x27a   : > { %v2847_v33 = vadd.f32 %v2846_v36, %v4042_v26 }
 0x27b   : > { %v2850_v27 = vadd.f32 %v2849_v5, %v4042_v26  ;;  %v2800_v47 = vpop.f32.mrb[18].mxu1 }
 0x27c   : > { %2393 = vst.msk [vmem:[%s4049_s23 + $0x8] sm:$0xff] %vm333_vm1, %v2847_v33  ;;  %v2853_v31 = vadd.f32 %v2852_v50, %v2800_v47  ;;  %v2211_v13 = vpop.f32.mrb[19].mxu1 }
 0x27d   : > { %2392 = vst.msk [vmem:[%s4049_s23] sm:$0xff] %vm333_vm1, %v2850_v27  ;;  %v2856_v38 = vadd.f32 %v2855_v28, %v2211_v13 }
 0x27e   : > { %2395 = vst.msk [vmem:[%s4049_s23 + $0x18] sm:$0xff] %vm333_vm1, %v2853_v31 }
 0x27f   : > { %2394 = vst.msk [vmem:[%s4049_s23 + $0x10] sm:$0xff] %vm333_vm1, %v2856_v38  ;;  %v2803_v60 = vpop.f32.mrb[20].mxu1 }
 0x280   : > { %v2859_v55 = vadd.f32 %v2858_v4, %v2803_v60  ;;  %v2221_v45 = vpop.f32.mrb[21].mxu1 }
 0x281   : > { %v2862_v57 = vadd.f32 %v2861_v24, %v2221_v45 }
 0x282   : > { %2397 = vst.msk [vmem:[%s4049_s23 + $0x28] sm:$0xff] %vm333_vm1, %v2859_v55 }
 0x283   : > { %2396 = vst.msk [vmem:[%s4049_s23 + $0x20] sm:$0xff] %vm333_vm1, %v2862_v57  ;;  %v2806_v35 = vpop.f32.mrb[22].mxu1 }
 0x284   : > { %v2865_v10 = vadd.f32 %v2864_v46, %v2806_v35  ;;  %v2231_v32 = vpop.f32.mrb[23].mxu1 }
 0x285   : > { %v2868_v39 = vadd.f32 %v2867_v2, %v2231_v32 }
 0x286   : > { %2399 = vst.msk [vmem:[%s4049_s23 + $0x38] sm:$0xff] %vm333_vm1, %v2865_v10 }
 0x287   : > { %2398 = vst.msk [vmem:[%s4049_s23 + $0x30] sm:$0xff] %vm333_vm1, %v2868_v39  ;;  %v2809_v49 = vpop.f32.mrb[24].mxu1 }
 0x288   : > { %v2871_v63 = vadd.f32 %v2870_v53, %v2809_v49  ;;  %v2241_v1 = vpop.f32.mrb[25].mxu1 }
 0x289   : > { %v2874_v22 = vadd.f32 %v2873_v37, %v2241_v1 }
 0x28a   : > { %2401 = vst.msk [vmem:[%s4049_s23 + $0x48] sm:$0xff] %vm333_vm1, %v2871_v63 }
 0x28b   : > { %2400 = vst.msk [vmem:[%s4049_s23 + $0x40] sm:$0xff] %vm333_vm1, %v2874_v22  ;;  %v2812_v51 = vpop.f32.mrb[26].mxu1 }
 0x28c   : > { %v2877_v12 = vadd.f32 %v2876_v44, %v2812_v51  ;;  %v2251_v54 = vpop.f32.mrb[27].mxu1 }
 0x28d   : > { %v2880_v62 = vadd.f32 %v2879_v48, %v2251_v54 }
 0x28e   : > { %2403 = vst.msk [vmem:[%s4049_s23 + $0x58] sm:$0xff] %vm333_vm1, %v2877_v12 }
 0x28f   : > { %2402 = vst.msk [vmem:[%s4049_s23 + $0x50] sm:$0xff] %vm333_vm1, %v2880_v62  ;;  %v2815_v14 = vpop.f32.mrb[28].mxu1 }
 0x290   : > { %v2883_v16 = vadd.f32 %v2882_v58, %v2815_v14  ;;  %v2261_v41 = vpop.f32.mrb[29].mxu1 }
 0x291   : > { %v2886_v42 = vadd.f32 %v2885_v19, %v2261_v41 }
 0x292   : > { %2405 = vst.msk [vmem:[%s4049_s23 + $0x68] sm:$0xff] %vm333_vm1, %v2883_v16 }
 0x293   : > { %2404 = vst.msk [vmem:[%s4049_s23 + $0x60] sm:$0xff] %vm333_vm1, %v2886_v42  ;;  %v2818_v7 = vpop.f32.mrb[30].mxu1 }
 0x294   : > { %v2889_v30 = vadd.f32 %v2888_v29, %v2818_v7  ;;  %v2271_v8 = vpop.f32.mrb[31].mxu1 }
 0x295   : > { %v2892_v9 = vadd.f32 %v2891_v56, %v2271_v8 }
 0x296   : > { %2407 = vst.msk [vmem:[%s4049_s23 + $0x78] sm:$0xff] %vm333_vm1, %v2889_v30 }
 0x297   : > { %2406 = vst.msk [vmem:[%s4049_s23 + $0x70] sm:$0xff] %vm333_vm1, %v2892_v9  ;;  %v2821_v6 = vpop.f32.mrb[0].mxu1 }
 0x298   : > { %v2894_v15 = vadd.f32 %v2895_v25, %v2821_v6  ;;  %v2281_v36 = vpop.f32.mrb[1].mxu1 }
 0x299   : > { %v2896_v23 = vadd.f32 %v2895_v25, %v2281_v36 }
 0x29a   : > { %2409 = vst.msk [vmem:[%s4049_s23 + $0x88] sm:$0xff] %vm333_vm1, %v2894_v15 }
 0x29b   : > { %2408 = vst.msk [vmem:[%s4049_s23 + $0x80] sm:$0xff] %vm333_vm1, %v2896_v23  ;;  %v2824_v5 = vpop.f32.mrb[2].mxu1 }
 0x29c   : > { %v2898_v17 = vadd.f32 %v2895_v25, %v2824_v5  ;;  %v2291_v3 = vpop.f32.mrb[3].mxu1 }
 0x29d   : > { %v2900_v26 = vadd.f32 %v2895_v25, %v2291_v3 }
 0x29e   : > { %2411 = vst.msk [vmem:[%s4049_s23 + $0x98] sm:$0xff] %vm333_vm1, %v2898_v17 }
 0x29f   : > { %2410 = vst.msk [vmem:[%s4049_s23 + $0x90] sm:$0xff] %vm333_vm1, %v2900_v26  ;;  %v2827_v33 = vpop.f32.mrb[4].mxu1 }
 0x2a0   : > { %v2902_v50 = vadd.f32 %v2895_v25, %v2827_v33  ;;  %v2301_v52 = vpop.f32.mrb[5].mxu1 }
 0x2a1   : > { %v2904_v27 = vadd.f32 %v2895_v25, %v2301_v52 }
 0x2a2   : > { %2413 = vst.msk [vmem:[%s4049_s23 + $0xa8] sm:$0xff] %vm333_vm1, %v2902_v50 }
 0x2a3   : > { %2412 = vst.msk [vmem:[%s4049_s23 + $0xa0] sm:$0xff] %vm333_vm1, %v2904_v27  ;;  %v2830_v47 = vpop.f32.mrb[6].mxu1 }
 0x2a4   : > { %v2906_v28 = vadd.f32 %v2895_v25, %v2830_v47  ;;  %v2311_v31 = vpop.f32.mrb[7].mxu1 }
 0x2a5   : > { %v2908_v13 = vadd.f32 %v2895_v25, %v2311_v31 }
 0x2a6   : > { %2415 = vst.msk [vmem:[%s4049_s23 + $0xb8] sm:$0xff] %vm333_vm1, %v2906_v28 }
 0x2a7   : > { %2414 = vst.msk [vmem:[%s4049_s23 + $0xb0] sm:$0xff] %vm333_vm1, %v2908_v13  ;;  %v2833_v38 = vpop.f32.mrb[8].mxu1 }
 0x2a8   : > { %v2910_v21 = vadd.f32 %v2895_v25, %v2833_v38  ;;  %v2321_v4 = vpop.f32.mrb[9].mxu1 }
 0x2a9   : > { %v2912_v0 = vadd.f32 %v2895_v25, %v2321_v4 }
 0x2aa   : > { %2417 = vst.msk [vmem:[%s4049_s23 + $0xc8] sm:$0xff] %vm333_vm1, %v2910_v21 }
 0x2ab   : > { %2416 = vst.msk [vmem:[%s4049_s23 + $0xc0] sm:$0xff] %vm333_vm1, %v2912_v0  ;;  %v2836_v60 = vpop.f32.mrb[10].mxu1 }
 0x2ac   : > { %v2914_v24 = vadd.f32 %v2895_v25, %v2836_v60  ;;  %v2331_v55 = vpop.f32.mrb[11].mxu1 }
 0x2ad   : > { %v2916_v45 = vadd.f32 %v2895_v25, %v2331_v55 }
 0x2ae   : > { %2419 = vst.msk [vmem:[%s4049_s23 + $0xd8] sm:$0xff] %vm333_vm1, %v2914_v24 }
 0x2af   : > { %2418 = vst.msk [vmem:[%s4049_s23 + $0xd0] sm:$0xff] %vm333_vm1, %v2916_v45  ;;  %v2839_v57 = vpop.f32.mrb[12].mxu1 }
 0x2b0   : > { %v2918_v20 = vadd.f32 %v2895_v25, %v2839_v57  ;;  %v2341_v46 = vpop.f32.mrb[13].mxu1 }
 0x2b1   : > { %v2920_v61 = vadd.f32 %v2895_v25, %v2341_v46 }
 0x2b2   : > { %2421 = vst.msk [vmem:[%s4049_s23 + $0xe8] sm:$0xff] %vm333_vm1, %v2918_v20 }
 0x2b3   : > { %2420 = vst.msk [vmem:[%s4049_s23 + $0xe0] sm:$0xff] %vm333_vm1, %v2920_v61  ;;  %v2842_v35 = vpop.f32.mrb[14].mxu1 }
 0x2b4   : > { %v2922_v2 = vadd.f32 %v2895_v25, %v2842_v35  ;;  %v2351_v10 = vpop.f32.mrb[15].mxu1 }
 0x2b5   : > { %v2924_v32 = vadd.f32 %v2895_v25, %v2351_v10 }
 0x2b6   : > { %2423 = vst.msk [vmem:[%s4049_s23 + $0xf8] sm:$0xff] %vm333_vm1, %v2922_v2 }
 0x2b7   : > { %2422 = vst.msk [vmem:[%s4049_s23 + $0xf0] sm:$0xff] %vm333_vm1, %v2924_v32 }
 0x2b8 PF: > { %s19_s30 = sadd.s32 1, %s2990_s30  }
 0x2b9   : > { %p16_p4 = scmp.ge.s32.totalorder %s19_s30, 4  }
 0x2bb   :  { %18 = sbr.rel (!%p16_p4) target bundleno = 1 (0x1), region = 88 }

</bundles_post_ra>
